<compile_context>
chip_gen: v7x
topology: tpu7x:2x2x1
jax: 0.10.0
libtpu: 0.0.40
codegen_flags: <defaults>
</compile_context>

<pallas_src>
import functools

import jax
import jax.numpy as jnp
from jax.experimental import pallas as pl
from jax.experimental.pallas import tpu as pltpu

# ----------------------------- config ---------------------------------------
SEQ = 8
BATCH = 2
N_EMBED = 100
D_EMBED = 32
D_PROJ = 32
D_HIDDEN = 32
D_OUT = 8
SEQ_IN_SIZE = 2 * D_HIDDEN  # bidirectional


# ----------------------------- fused kernel ----------------------------------
def fused_forward_kernel(ids_ref, embed_ref, proj_w_ref, proj_b_ref,
                         wih_f_ref, whh_f_ref, b_f_ref,
                         wih_b_ref, whh_b_ref, b_b_ref,
                         o1_w_ref, o1_b_ref, o2_w_ref, o2_b_ref,
                         o3_w_ref, o3_b_ref,
                         out_ref, rnn_ref, *, seq, batch):
    """Entire SequenceLabeler forward in one kernel invocation (grid=())."""
    SB = seq * batch
    vocab = embed_ref.shape[0]
    H = whh_f_ref.shape[0]

    # 1) Embedding lookup as a one-hot MXU matmul (gather stays in-kernel,
    #    fix_emb detach is a no-op at inference).
    ids = ids_ref[...]                                              # (SB, 1) int32
    vocab_iota = jax.lax.broadcasted_iota(jnp.int32, (SB, vocab), 1)
    onehot = (vocab_iota == ids).astype(jnp.float32)                # (SB, V)
    emb = jnp.dot(onehot, embed_ref[...],
                  preferred_element_type=jnp.float32)               # (SB, D_EMBED)

    # 2) Projection + ReLU (dropout p=0.0 == identity).
    x = jnp.maximum(
        jnp.dot(emb, proj_w_ref[...], preferred_element_type=jnp.float32)
        + proj_b_ref[...], 0.0)                                     # (SB, D_PROJ)

    # 3) Hoisted input-to-hidden gate pre-activations for both directions:
    #    one (SB, I) @ (I, 4H) matmul per direction, off the serial chain.
    gx_f = (jnp.dot(x, wih_f_ref[...], preferred_element_type=jnp.float32)
            + b_f_ref[...])                                         # (SB, 4H)
    gx_b = (jnp.dot(x, wih_b_ref[...], preferred_element_type=jnp.float32)
            + b_b_ref[...])                                         # (SB, 4H)

    whh_f = whh_f_ref[...]
    whh_b = whh_b_ref[...]

    def cell(gx_t, h, c, whh):
        # Only the small h @ W_hh matmul remains on the recurrent critical path.
        gates = gx_t + jnp.dot(h, whh, preferred_element_type=jnp.float32)  # (B, 4H)
        sg = jax.nn.sigmoid(gates)   # full-width EUP op (covers i, f, o)
        th = jnp.tanh(gates)         # full-width EUP op (covers g)
        i = sg[:, 0:H]
        f = sg[:, H:2 * H]
        g = th[:, 2 * H:3 * H]
        o = sg[:, 3 * H:4 * H]
        c_new = f * c + i * g
        h_new = o * jnp.tanh(c_new)
        return h_new, c_new

    zeros = jnp.zeros((batch, H), jnp.float32)
    h_f, c_f = zeros, zeros
    h_b, c_b = zeros, zeros

    # Fully unrolled time loop (seq is small & static): the two directions'
    # independent work interleaves in the VLIW schedule; hidden states are
    # written to VMEM scratch only (no per-step HBM stores).
    for t in range(seq):
        tb = seq - 1 - t
        h_f, c_f = cell(gx_f[t * batch:(t + 1) * batch, :], h_f, c_f, whh_f)
        h_b, c_b = cell(gx_b[tb * batch:(tb + 1) * batch, :], h_b, c_b, whh_b)
        rnn_ref[t * batch:(t + 1) * batch, 0:H] = h_f
        rnn_ref[tb * batch:(tb + 1) * batch, H:2 * H] = h_b

    # 4) Output MLP head (dropout == identity). Final (SB, D_OUT) store is a
    #    single small masked store; negligible at this size.
    r = rnn_ref[...]                                                # (SB, 2H)
    y = jnp.maximum(
        jnp.dot(r, o1_w_ref[...], preferred_element_type=jnp.float32)
        + o1_b_ref[...], 0.0)
    y = jnp.maximum(
        jnp.dot(y, o2_w_ref[...], preferred_element_type=jnp.float32)
        + o2_b_ref[...], 0.0)
    out_ref[...] = (
        jnp.dot(y, o3_w_ref[...], preferred_element_type=jnp.float32)
        + o3_b_ref[...])


# ----------------------------- wrapper ----------------------------------------
def sequence_labeler_forward(words, params):
    """words: (S, B) int32 token ids  ->  scores: (S, B, d_out) float32."""
    S, B = words.shape
    d_out = params["o3_w"].shape[1]
    seq_in = params["o1_w"].shape[0]

    ids = words.reshape(S * B, 1).astype(jnp.int32)   # tiny host-side glue

    kernel = functools.partial(fused_forward_kernel, seq=S, batch=B)
    vmem_specs = [pl.BlockSpec(memory_space=pltpu.MemorySpace.VMEM)
                  for _ in range(16)]

    out = pl.pallas_call(
        kernel,
        out_shape=jax.ShapeDtypeStruct((S * B, d_out), jnp.float32),
        in_specs=vmem_specs,
        out_specs=pl.BlockSpec(memory_space=pltpu.MemorySpace.VMEM),
        scratch_shapes=[pltpu.VMEM((S * B, seq_in), jnp.float32)],
    )(ids, params["embed"], params["proj_w"], params["proj_b"],
      params["wih_f"], params["whh_f"], params["b_f"],
      params["wih_b"], params["whh_b"], params["b_b"],
      params["o1_w"], params["o1_b"], params["o2_w"], params["o2_b"],
      params["o3_w"], params["o3_b"])
    return out.reshape(S, B, d_out)


# ----------------------------- pure-JAX reference -----------------------------
def _lstm_ref(x, w_ih, w_hh, b, *, reverse):
    S, B, _ = x.shape
    H = w_hh.shape[0]

    def step(carry, x_t):
        h, c = carry
        gates = x_t @ w_ih + h @ w_hh + b[0]
        i = jax.nn.sigmoid(gates[:, :H])
        f = jax.nn.sigmoid(gates[:, H:2 * H])
        g = jnp.tanh(gates[:, 2 * H:3 * H])
        o = jax.nn.sigmoid(gates[:, 3 * H:])
        c = f * c + i * g
        h = o * jnp.tanh(c)
        return (h, c), h

    xs = x[::-1] if reverse else x
    _, hs = jax.lax.scan(step, (jnp.zeros((B, H)), jnp.zeros((B, H))), xs)
    return hs[::-1] if reverse else hs


def reference_forward(words, params):
    e = jnp.take(params["embed"], words, axis=0)
    x = jnp.maximum(e @ params["proj_w"] + params["proj_b"][0], 0.0)
    out_f = _lstm_ref(x, params["wih_f"], params["whh_f"], params["b_f"], reverse=False)
    out_b = _lstm_ref(x, params["wih_b"], params["whh_b"], params["b_b"], reverse=True)
    r = jnp.concatenate([out_f, out_b], axis=-1)
    y = jnp.maximum(r @ params["o1_w"] + params["o1_b"][0], 0.0)
    y = jnp.maximum(y @ params["o2_w"] + params["o2_b"][0], 0.0)
    return y @ params["o3_w"] + params["o3_b"][0]


# ----------------------------- main -------------------------------------------
def make_params(key):
    ks = jax.random.split(key, 16)
    s = 0.1

    def rnd(k, shape):
        return (s * jax.random.normal(k, shape)).astype(jnp.float32)

    return {
        "embed": rnd(ks[0], (N_EMBED, D_EMBED)),
        "proj_w": rnd(ks[1], (D_EMBED, D_PROJ)),
        "proj_b": rnd(ks[2], (1, D_PROJ)),
        # forward-direction LSTM (b = b_ih + b_hh folded, PyTorch gate order i,f,g,o)
        "wih_f": rnd(ks[3], (D_PROJ, 4 * D_HIDDEN)),
        "whh_f": rnd(ks[4], (D_HIDDEN, 4 * D_HIDDEN)),
        "b_f": rnd(ks[5], (1, 4 * D_HIDDEN)),
        # backward-direction LSTM
        "wih_b": rnd(ks[6], (D_PROJ, 4 * D_HIDDEN)),
        "whh_b": rnd(ks[7], (D_HIDDEN, 4 * D_HIDDEN)),
        "b_b": rnd(ks[8], (1, 4 * D_HIDDEN)),
        # output MLP
        "o1_w": rnd(ks[9], (SEQ_IN_SIZE, SEQ_IN_SIZE)),
        "o1_b": rnd(ks[10], (1, SEQ_IN_SIZE)),
        "o2_w": rnd(ks[11], (SEQ_IN_SIZE, SEQ_IN_SIZE)),
        "o2_b": rnd(ks[12], (1, SEQ_IN_SIZE)),
        "o3_w": rnd(ks[13], (SEQ_IN_SIZE, D_OUT)),
        "o3_b": rnd(ks[14], (1, D_OUT)),
    }


if __name__ == "__main__":
    key = jax.random.PRNGKey(0)
    k_param, k_words = jax.random.split(key)
    params = make_params(k_param)
    words = jax.random.randint(k_words, (SEQ, BATCH), 0, N_EMBED, dtype=jnp.int32)

    forward = jax.jit(sequence_labeler_forward)
    scores = jax.block_until_ready(forward(words, params))
    assert scores.shape == (SEQ, BATCH, D_OUT)

    ref = jax.block_until_ready(reference_forward(words, params))
    assert jnp.allclose(scores, ref, rtol=1e-3, atol=1e-3), (
        float(jnp.max(jnp.abs(scores - ref))))

    print("KERNEL_OK")
</pallas_src>

<mosaic_0001>
module attributes {stable_mosaic.version = 11 : i64} {
  func.func @fused_forward_kernel(%arg0: memref<16x1xi32, #tpu.memory_space<vmem>>, %arg1: memref<100x32xf32, #tpu.memory_space<vmem>>, %arg2: memref<32x32xf32, #tpu.memory_space<vmem>>, %arg3: memref<1x32xf32, #tpu.memory_space<vmem>>, %arg4: memref<32x128xf32, #tpu.memory_space<vmem>>, %arg5: memref<32x128xf32, #tpu.memory_space<vmem>>, %arg6: memref<1x128xf32, #tpu.memory_space<vmem>>, %arg7: memref<32x128xf32, #tpu.memory_space<vmem>>, %arg8: memref<32x128xf32, #tpu.memory_space<vmem>>, %arg9: memref<1x128xf32, #tpu.memory_space<vmem>>, %arg10: memref<64x64xf32, #tpu.memory_space<vmem>>, %arg11: memref<1x64xf32, #tpu.memory_space<vmem>>, %arg12: memref<64x64xf32, #tpu.memory_space<vmem>>, %arg13: memref<1x64xf32, #tpu.memory_space<vmem>>, %arg14: memref<64x8xf32, #tpu.memory_space<vmem>>, %arg15: memref<1x8xf32, #tpu.memory_space<vmem>>, %arg16: memref<16x8xf32, #tpu.memory_space<vmem>>, %arg17: memref<16x64xf32, #tpu.memory_space<vmem>>) attributes {dimension_semantics = [], scalar_prefetch = 0 : i64, scratch_operands = 1 : i64, tpu.core_type = #tpu.core_type<tc>} {
    %c0 = arith.constant 0 : index
    %c0_0 = arith.constant 0 : index
    %0 = vector.load %arg0[%c0, %c0_0] : memref<16x1xi32, #tpu.memory_space<vmem>>, vector<16x1xi32>
    %1 = tpu.iota {dimensions = array<i32: 1>} : vector<16x100xi32>
    %2 = vector.broadcast %0 : vector<16x1xi32> to vector<16x100xi32>
    %3 = arith.cmpi eq, %1, %2 : vector<16x100xi32>
    %4 = arith.extui %3 : vector<16x100xi1> to vector<16x100xi32>
    %5 = arith.sitofp %4 : vector<16x100xi32> to vector<16x100xf32>
    %c0_1 = arith.constant 0 : index
    %c0_2 = arith.constant 0 : index
    %6 = vector.load %arg1[%c0_1, %c0_2] : memref<100x32xf32, #tpu.memory_space<vmem>>, vector<100x32xf32>
    %cst = arith.constant dense<0.000000e+00> : vector<16x32xf32>
    %7 = tpu.matmul %5, %6, %cst {dimension_numbers = #tpu.dot_dimension_numbers<[1], [0], [0], [1], [0, 0, 1, 1], [], []>} : vector<16x100xf32>, vector<100x32xf32>, vector<16x32xf32> -> vector<16x32xf32>
    %c0_3 = arith.constant 0 : index
    %c0_4 = arith.constant 0 : index
    %8 = vector.load %arg2[%c0_3, %c0_4] : memref<32x32xf32, #tpu.memory_space<vmem>>, vector<32x32xf32>
    %cst_5 = arith.constant dense<0.000000e+00> : vector<16x32xf32>
    %9 = tpu.matmul %7, %8, %cst_5 {dimension_numbers = #tpu.dot_dimension_numbers<[1], [0], [0], [1], [0, 0, 1, 1], [], []>} : vector<16x32xf32>, vector<32x32xf32>, vector<16x32xf32> -> vector<16x32xf32>
    %c0_6 = arith.constant 0 : index
    %c0_7 = arith.constant 0 : index
    %10 = vector.load %arg3[%c0_6, %c0_7] : memref<1x32xf32, #tpu.memory_space<vmem>>, vector<1x32xf32>
    %11 = vector.broadcast %10 : vector<1x32xf32> to vector<16x32xf32>
    %12 = arith.addf %9, %11 : vector<16x32xf32>
    %cst_8 = arith.constant 0.000000e+00 : f32
    %13 = vector.broadcast %cst_8 : f32 to vector<16x32xf32>
    %14 = arith.maximumf %12, %13 : vector<16x32xf32>
    %c0_9 = arith.constant 0 : index
    %c0_10 = arith.constant 0 : index
    %15 = vector.load %arg4[%c0_9, %c0_10] : memref<32x128xf32, #tpu.memory_space<vmem>>, vector<32x128xf32>
    %cst_11 = arith.constant dense<0.000000e+00> : vector<16x128xf32>
    %16 = tpu.matmul %14, %15, %cst_11 {dimension_numbers = #tpu.dot_dimension_numbers<[1], [0], [0], [1], [0, 0, 1, 1], [], []>} : vector<16x32xf32>, vector<32x128xf32>, vector<16x128xf32> -> vector<16x128xf32>
    %c0_12 = arith.constant 0 : index
    %c0_13 = arith.constant 0 : index
    %17 = vector.load %arg6[%c0_12, %c0_13] : memref<1x128xf32, #tpu.memory_space<vmem>>, vector<1x128xf32>
    %18 = vector.broadcast %17 : vector<1x128xf32> to vector<16x128xf32>
    %19 = arith.addf %16, %18 : vector<16x128xf32>
    %c0_14 = arith.constant 0 : index
    %c0_15 = arith.constant 0 : index
    %20 = vector.load %arg7[%c0_14, %c0_15] : memref<32x128xf32, #tpu.memory_space<vmem>>, vector<32x128xf32>
    %cst_16 = arith.constant dense<0.000000e+00> : vector<16x128xf32>
    %21 = tpu.matmul %14, %20, %cst_16 {dimension_numbers = #tpu.dot_dimension_numbers<[1], [0], [0], [1], [0, 0, 1, 1], [], []>} : vector<16x32xf32>, vector<32x128xf32>, vector<16x128xf32> -> vector<16x128xf32>
    %c0_17 = arith.constant 0 : index
    %c0_18 = arith.constant 0 : index
    %22 = vector.load %arg9[%c0_17, %c0_18] : memref<1x128xf32, #tpu.memory_space<vmem>>, vector<1x128xf32>
    %23 = vector.broadcast %22 : vector<1x128xf32> to vector<16x128xf32>
    %24 = arith.addf %21, %23 : vector<16x128xf32>
    %c0_19 = arith.constant 0 : index
    %c0_20 = arith.constant 0 : index
    %25 = vector.load %arg5[%c0_19, %c0_20] : memref<32x128xf32, #tpu.memory_space<vmem>>, vector<32x128xf32>
    %c0_21 = arith.constant 0 : index
    %c0_22 = arith.constant 0 : index
    %26 = vector.load %arg8[%c0_21, %c0_22] : memref<32x128xf32, #tpu.memory_space<vmem>>, vector<32x128xf32>
    %cst_23 = arith.constant 0.000000e+00 : f32
    %27 = vector.broadcast %cst_23 : f32 to vector<2x32xf32>
    %28 = vector.extract_strided_slice %19 {offsets = [0, 0], sizes = [2, 128], strides = [1, 1]} : vector<16x128xf32> to vector<2x128xf32>
    %cst_24 = arith.constant dense<0.000000e+00> : vector<2x128xf32>
    %29 = tpu.matmul %27, %25, %cst_24 {dimension_numbers = #tpu.dot_dimension_numbers<[1], [0], [0], [1], [0, 0, 1, 1], [], []>} : vector<2x32xf32>, vector<32x128xf32>, vector<2x128xf32> -> vector<2x128xf32>
    %30 = arith.addf %28, %29 : vector<2x128xf32>
    %31 = arith.negf %30 : vector<2x128xf32>
    %32 = math.exp %31 : vector<2x128xf32>
    %cst_25 = arith.constant 1.000000e+00 : f32
    %33 = vector.broadcast %cst_25 : f32 to vector<2x128xf32>
    %34 = arith.addf %33, %32 : vector<2x128xf32>
    %35 = arith.divf %33, %34 : vector<2x128xf32>
    %36 = math.tanh %30 : vector<2x128xf32>
    %37 = vector.extract_strided_slice %35 {offsets = [0, 0], sizes = [2, 32], strides = [1, 1]} : vector<2x128xf32> to vector<2x32xf32>
    %38 = vector.extract_strided_slice %35 {offsets = [0, 32], sizes = [2, 32], strides = [1, 1]} : vector<2x128xf32> to vector<2x32xf32>
    %39 = vector.extract_strided_slice %36 {offsets = [0, 64], sizes = [2, 32], strides = [1, 1]} : vector<2x128xf32> to vector<2x32xf32>
    %40 = vector.extract_strided_slice %35 {offsets = [0, 96], sizes = [2, 32], strides = [1, 1]} : vector<2x128xf32> to vector<2x32xf32>
    %41 = arith.mulf %38, %27 : vector<2x32xf32>
    %42 = arith.mulf %37, %39 : vector<2x32xf32>
    %43 = arith.addf %41, %42 : vector<2x32xf32>
    %44 = math.tanh %43 : vector<2x32xf32>
    %45 = arith.mulf %40, %44 : vector<2x32xf32>
    %46 = vector.extract_strided_slice %24 {offsets = [14, 0], sizes = [2, 128], strides = [1, 1]} : vector<16x128xf32> to vector<2x128xf32>
    %cst_26 = arith.constant dense<0.000000e+00> : vector<2x128xf32>
    %47 = tpu.matmul %27, %26, %cst_26 {dimension_numbers = #tpu.dot_dimension_numbers<[1], [0], [0], [1], [0, 0, 1, 1], [], []>} : vector<2x32xf32>, vector<32x128xf32>, vector<2x128xf32> -> vector<2x128xf32>
    %48 = arith.addf %46, %47 : vector<2x128xf32>
    %49 = arith.negf %48 : vector<2x128xf32>
    %50 = math.exp %49 : vector<2x128xf32>
    %cst_27 = arith.constant 1.000000e+00 : f32
    %51 = vector.broadcast %cst_27 : f32 to vector<2x128xf32>
    %52 = arith.addf %51, %50 : vector<2x128xf32>
    %53 = arith.divf %51, %52 : vector<2x128xf32>
    %54 = math.tanh %48 : vector<2x128xf32>
    %55 = vector.extract_strided_slice %53 {offsets = [0, 0], sizes = [2, 32], strides = [1, 1]} : vector<2x128xf32> to vector<2x32xf32>
    %56 = vector.extract_strided_slice %53 {offsets = [0, 32], sizes = [2, 32], strides = [1, 1]} : vector<2x128xf32> to vector<2x32xf32>
    %57 = vector.extract_strided_slice %54 {offsets = [0, 64], sizes = [2, 32], strides = [1, 1]} : vector<2x128xf32> to vector<2x32xf32>
    %58 = vector.extract_strided_slice %53 {offsets = [0, 96], sizes = [2, 32], strides = [1, 1]} : vector<2x128xf32> to vector<2x32xf32>
    %59 = arith.mulf %56, %27 : vector<2x32xf32>
    %60 = arith.mulf %55, %57 : vector<2x32xf32>
    %61 = arith.addf %59, %60 : vector<2x32xf32>
    %62 = math.tanh %61 : vector<2x32xf32>
    %63 = arith.mulf %58, %62 : vector<2x32xf32>
    %c0_28 = arith.constant 0 : index
    %c0_29 = arith.constant 0 : index
    %64 = vector.load %arg17[%c0_28, %c0_29] : memref<16x64xf32, #tpu.memory_space<vmem>>, vector<2x32xf32>
    tpu.vector_store %arg17[%c0_28, %c0_29], %45 {strides = array<i32>} : memref<16x64xf32, #tpu.memory_space<vmem>>, vector<2x32xf32>,
    %c14 = arith.constant 14 : index
    %c32 = arith.constant 32 : index
    %65 = vector.load %arg17[%c14, %c32] : memref<16x64xf32, #tpu.memory_space<vmem>>, vector<2x32xf32>
    tpu.vector_store %arg17[%c14, %c32], %63 {strides = array<i32>} : memref<16x64xf32, #tpu.memory_space<vmem>>, vector<2x32xf32>,
    %66 = vector.extract_strided_slice %19 {offsets = [2, 0], sizes = [2, 128], strides = [1, 1]} : vector<16x128xf32> to vector<2x128xf32>
    %cst_30 = arith.constant dense<0.000000e+00> : vector<2x128xf32>
    %67 = tpu.matmul %45, %25, %cst_30 {dimension_numbers = #tpu.dot_dimension_numbers<[1], [0], [0], [1], [0, 0, 1, 1], [], []>} : vector<2x32xf32>, vector<32x128xf32>, vector<2x128xf32> -> vector<2x128xf32>
    %68 = arith.addf %66, %67 : vector<2x128xf32>
    %69 = arith.negf %68 : vector<2x128xf32>
    %70 = math.exp %69 : vector<2x128xf32>
    %cst_31 = arith.constant 1.000000e+00 : f32
    %71 = vector.broadcast %cst_31 : f32 to vector<2x128xf32>
    %72 = arith.addf %71, %70 : vector<2x128xf32>
    %73 = arith.divf %71, %72 : vector<2x128xf32>
    %74 = math.tanh %68 : vector<2x128xf32>
    %75 = vector.extract_strided_slice %73 {offsets = [0, 0], sizes = [2, 32], strides = [1, 1]} : vector<2x128xf32> to vector<2x32xf32>
    %76 = vector.extract_strided_slice %73 {offsets = [0, 32], sizes = [2, 32], strides = [1, 1]} : vector<2x128xf32> to vector<2x32xf32>
    %77 = vector.extract_strided_slice %74 {offsets = [0, 64], sizes = [2, 32], strides = [1, 1]} : vector<2x128xf32> to vector<2x32xf32>
    %78 = vector.extract_strided_slice %73 {offsets = [0, 96], sizes = [2, 32], strides = [1, 1]} : vector<2x128xf32> to vector<2x32xf32>
    %79 = arith.mulf %76, %43 : vector<2x32xf32>
    %80 = arith.mulf %75, %77 : vector<2x32xf32>
    %81 = arith.addf %79, %80 : vector<2x32xf32>
    %82 = math.tanh %81 : vector<2x32xf32>
    %83 = arith.mulf %78, %82 : vector<2x32xf32>
    %84 = vector.extract_strided_slice %24 {offsets = [12, 0], sizes = [2, 128], strides = [1, 1]} : vector<16x128xf32> to vector<2x128xf32>
    %cst_32 = arith.constant dense<0.000000e+00> : vector<2x128xf32>
    %85 = tpu.matmul %63, %26, %cst_32 {dimension_numbers = #tpu.dot_dimension_numbers<[1], [0], [0], [1], [0, 0, 1, 1], [], []>} : vector<2x32xf32>, vector<32x128xf32>, vector<2x128xf32> -> vector<2x128xf32>
    %86 = arith.addf %84, %85 : vector<2x128xf32>
    %87 = arith.negf %86 : vector<2x128xf32>
    %88 = math.exp %87 : vector<2x128xf32>
    %cst_33 = arith.constant 1.000000e+00 : f32
    %89 = vector.broadcast %cst_33 : f32 to vector<2x128xf32>
    %90 = arith.addf %89, %88 : vector<2x128xf32>
    %91 = arith.divf %89, %90 : vector<2x128xf32>
    %92 = math.tanh %86 : vector<2x128xf32>
    %93 = vector.extract_strided_slice %91 {offsets = [0, 0], sizes = [2, 32], strides = [1, 1]} : vector<2x128xf32> to vector<2x32xf32>
    %94 = vector.extract_strided_slice %91 {offsets = [0, 32], sizes = [2, 32], strides = [1, 1]} : vector<2x128xf32> to vector<2x32xf32>
    %95 = vector.extract_strided_slice %92 {offsets = [0, 64], sizes = [2, 32], strides = [1, 1]} : vector<2x128xf32> to vector<2x32xf32>
    %96 = vector.extract_strided_slice %91 {offsets = [0, 96], sizes = [2, 32], strides = [1, 1]} : vector<2x128xf32> to vector<2x32xf32>
    %97 = arith.mulf %94, %61 : vector<2x32xf32>
    %98 = arith.mulf %93, %95 : vector<2x32xf32>
    %99 = arith.addf %97, %98 : vector<2x32xf32>
    %100 = math.tanh %99 : vector<2x32xf32>
    %101 = arith.mulf %96, %100 : vector<2x32xf32>
    %c2 = arith.constant 2 : index
    %c0_34 = arith.constant 0 : index
    %102 = vector.load %arg17[%c2, %c0_34] : memref<16x64xf32, #tpu.memory_space<vmem>>, vector<2x32xf32>
    tpu.vector_store %arg17[%c2, %c0_34], %83 {strides = array<i32>} : memref<16x64xf32, #tpu.memory_space<vmem>>, vector<2x32xf32>,
    %c12 = arith.constant 12 : index
    %c32_35 = arith.constant 32 : index
    %103 = vector.load %arg17[%c12, %c32_35] : memref<16x64xf32, #tpu.memory_space<vmem>>, vector<2x32xf32>
    tpu.vector_store %arg17[%c12, %c32_35], %101 {strides = array<i32>} : memref<16x64xf32, #tpu.memory_space<vmem>>, vector<2x32xf32>,
    %104 = vector.extract_strided_slice %19 {offsets = [4, 0], sizes = [2, 128], strides = [1, 1]} : vector<16x128xf32> to vector<2x128xf32>
    %cst_36 = arith.constant dense<0.000000e+00> : vector<2x128xf32>
    %105 = tpu.matmul %83, %25, %cst_36 {dimension_numbers = #tpu.dot_dimension_numbers<[1], [0], [0], [1], [0, 0, 1, 1], [], []>} : vector<2x32xf32>, vector<32x128xf32>, vector<2x128xf32> -> vector<2x128xf32>
    %106 = arith.addf %104, %105 : vector<2x128xf32>
    %107 = arith.negf %106 : vector<2x128xf32>
    %108 = math.exp %107 : vector<2x128xf32>
    %cst_37 = arith.constant 1.000000e+00 : f32
    %109 = vector.broadcast %cst_37 : f32 to vector<2x128xf32>
    %110 = arith.addf %109, %108 : vector<2x128xf32>
    %111 = arith.divf %109, %110 : vector<2x128xf32>
    %112 = math.tanh %106 : vector<2x128xf32>
    %113 = vector.extract_strided_slice %111 {offsets = [0, 0], sizes = [2, 32], strides = [1, 1]} : vector<2x128xf32> to vector<2x32xf32>
    %114 = vector.extract_strided_slice %111 {offsets = [0, 32], sizes = [2, 32], strides = [1, 1]} : vector<2x128xf32> to vector<2x32xf32>
    %115 = vector.extract_strided_slice %112 {offsets = [0, 64], sizes = [2, 32], strides = [1, 1]} : vector<2x128xf32> to vector<2x32xf32>
    %116 = vector.extract_strided_slice %111 {offsets = [0, 96], sizes = [2, 32], strides = [1, 1]} : vector<2x128xf32> to vector<2x32xf32>
    %117 = arith.mulf %114, %81 : vector<2x32xf32>
    %118 = arith.mulf %113, %115 : vector<2x32xf32>
    %119 = arith.addf %117, %118 : vector<2x32xf32>
    %120 = math.tanh %119 : vector<2x32xf32>
    %121 = arith.mulf %116, %120 : vector<2x32xf32>
    %122 = vector.extract_strided_slice %24 {offsets = [10, 0], sizes = [2, 128], strides = [1, 1]} : vector<16x128xf32> to vector<2x128xf32>
    %cst_38 = arith.constant dense<0.000000e+00> : vector<2x128xf32>
    %123 = tpu.matmul %101, %26, %cst_38 {dimension_numbers = #tpu.dot_dimension_numbers<[1], [0], [0], [1], [0, 0, 1, 1], [], []>} : vector<2x32xf32>, vector<32x128xf32>, vector<2x128xf32> -> vector<2x128xf32>
    %124 = arith.addf %122, %123 : vector<2x128xf32>
    %125 = arith.negf %124 : vector<2x128xf32>
    %126 = math.exp %125 : vector<2x128xf32>
    %cst_39 = arith.constant 1.000000e+00 : f32
    %127 = vector.broadcast %cst_39 : f32 to vector<2x128xf32>
    %128 = arith.addf %127, %126 : vector<2x128xf32>
    %129 = arith.divf %127, %128 : vector<2x128xf32>
    %130 = math.tanh %124 : vector<2x128xf32>
    %131 = vector.extract_strided_slice %129 {offsets = [0, 0], sizes = [2, 32], strides = [1, 1]} : vector<2x128xf32> to vector<2x32xf32>
    %132 = vector.extract_strided_slice %129 {offsets = [0, 32], sizes = [2, 32], strides = [1, 1]} : vector<2x128xf32> to vector<2x32xf32>
    %133 = vector.extract_strided_slice %130 {offsets = [0, 64], sizes = [2, 32], strides = [1, 1]} : vector<2x128xf32> to vector<2x32xf32>
    %134 = vector.extract_strided_slice %129 {offsets = [0, 96], sizes = [2, 32], strides = [1, 1]} : vector<2x128xf32> to vector<2x32xf32>
    %135 = arith.mulf %132, %99 : vector<2x32xf32>
    %136 = arith.mulf %131, %133 : vector<2x32xf32>
    %137 = arith.addf %135, %136 : vector<2x32xf32>
    %138 = math.tanh %137 : vector<2x32xf32>
    %139 = arith.mulf %134, %138 : vector<2x32xf32>
    %c4 = arith.constant 4 : index
    %c0_40 = arith.constant 0 : index
    %140 = vector.load %arg17[%c4, %c0_40] : memref<16x64xf32, #tpu.memory_space<vmem>>, vector<2x32xf32>
    tpu.vector_store %arg17[%c4, %c0_40], %121 {strides = array<i32>} : memref<16x64xf32, #tpu.memory_space<vmem>>, vector<2x32xf32>,
    %c10 = arith.constant 10 : index
    %c32_41 = arith.constant 32 : index
    %141 = vector.load %arg17[%c10, %c32_41] : memref<16x64xf32, #tpu.memory_space<vmem>>, vector<2x32xf32>
    tpu.vector_store %arg17[%c10, %c32_41], %139 {strides = array<i32>} : memref<16x64xf32, #tpu.memory_space<vmem>>, vector<2x32xf32>,
    %142 = vector.extract_strided_slice %19 {offsets = [6, 0], sizes = [2, 128], strides = [1, 1]} : vector<16x128xf32> to vector<2x128xf32>
    %cst_42 = arith.constant dense<0.000000e+00> : vector<2x128xf32>
    %143 = tpu.matmul %121, %25, %cst_42 {dimension_numbers = #tpu.dot_dimension_numbers<[1], [0], [0], [1], [0, 0, 1, 1], [], []>} : vector<2x32xf32>, vector<32x128xf32>, vector<2x128xf32> -> vector<2x128xf32>
    %144 = arith.addf %142, %143 : vector<2x128xf32>
    %145 = arith.negf %144 : vector<2x128xf32>
    %146 = math.exp %145 : vector<2x128xf32>
    %cst_43 = arith.constant 1.000000e+00 : f32
    %147 = vector.broadcast %cst_43 : f32 to vector<2x128xf32>
    %148 = arith.addf %147, %146 : vector<2x128xf32>
    %149 = arith.divf %147, %148 : vector<2x128xf32>
    %150 = math.tanh %144 : vector<2x128xf32>
    %151 = vector.extract_strided_slice %149 {offsets = [0, 0], sizes = [2, 32], strides = [1, 1]} : vector<2x128xf32> to vector<2x32xf32>
    %152 = vector.extract_strided_slice %149 {offsets = [0, 32], sizes = [2, 32], strides = [1, 1]} : vector<2x128xf32> to vector<2x32xf32>
    %153 = vector.extract_strided_slice %150 {offsets = [0, 64], sizes = [2, 32], strides = [1, 1]} : vector<2x128xf32> to vector<2x32xf32>
    %154 = vector.extract_strided_slice %149 {offsets = [0, 96], sizes = [2, 32], strides = [1, 1]} : vector<2x128xf32> to vector<2x32xf32>
    %155 = arith.mulf %152, %119 : vector<2x32xf32>
    %156 = arith.mulf %151, %153 : vector<2x32xf32>
    %157 = arith.addf %155, %156 : vector<2x32xf32>
    %158 = math.tanh %157 : vector<2x32xf32>
    %159 = arith.mulf %154, %158 : vector<2x32xf32>
    %160 = vector.extract_strided_slice %24 {offsets = [8, 0], sizes = [2, 128], strides = [1, 1]} : vector<16x128xf32> to vector<2x128xf32>
    %cst_44 = arith.constant dense<0.000000e+00> : vector<2x128xf32>
    %161 = tpu.matmul %139, %26, %cst_44 {dimension_numbers = #tpu.dot_dimension_numbers<[1], [0], [0], [1], [0, 0, 1, 1], [], []>} : vector<2x32xf32>, vector<32x128xf32>, vector<2x128xf32> -> vector<2x128xf32>
    %162 = arith.addf %160, %161 : vector<2x128xf32>
    %163 = arith.negf %162 : vector<2x128xf32>
    %164 = math.exp %163 : vector<2x128xf32>
    %cst_45 = arith.constant 1.000000e+00 : f32
    %165 = vector.broadcast %cst_45 : f32 to vector<2x128xf32>
    %166 = arith.addf %165, %164 : vector<2x128xf32>
    %167 = arith.divf %165, %166 : vector<2x128xf32>
    %168 = math.tanh %162 : vector<2x128xf32>
    %169 = vector.extract_strided_slice %167 {offsets = [0, 0], sizes = [2, 32], strides = [1, 1]} : vector<2x128xf32> to vector<2x32xf32>
    %170 = vector.extract_strided_slice %167 {offsets = [0, 32], sizes = [2, 32], strides = [1, 1]} : vector<2x128xf32> to vector<2x32xf32>
    %171 = vector.extract_strided_slice %168 {offsets = [0, 64], sizes = [2, 32], strides = [1, 1]} : vector<2x128xf32> to vector<2x32xf32>
    %172 = vector.extract_strided_slice %167 {offsets = [0, 96], sizes = [2, 32], strides = [1, 1]} : vector<2x128xf32> to vector<2x32xf32>
    %173 = arith.mulf %170, %137 : vector<2x32xf32>
    %174 = arith.mulf %169, %171 : vector<2x32xf32>
    %175 = arith.addf %173, %174 : vector<2x32xf32>
    %176 = math.tanh %175 : vector<2x32xf32>
    %177 = arith.mulf %172, %176 : vector<2x32xf32>
    %c6 = arith.constant 6 : index
    %c0_46 = arith.constant 0 : index
    %178 = vector.load %arg17[%c6, %c0_46] : memref<16x64xf32, #tpu.memory_space<vmem>>, vector<2x32xf32>
    tpu.vector_store %arg17[%c6, %c0_46], %159 {strides = array<i32>} : memref<16x64xf32, #tpu.memory_space<vmem>>, vector<2x32xf32>,
    %c8 = arith.constant 8 : index
    %c32_47 = arith.constant 32 : index
    %179 = vector.load %arg17[%c8, %c32_47] : memref<16x64xf32, #tpu.memory_space<vmem>>, vector<2x32xf32>
    tpu.vector_store %arg17[%c8, %c32_47], %177 {strides = array<i32>} : memref<16x64xf32, #tpu.memory_space<vmem>>, vector<2x32xf32>,
    %180 = vector.extract_strided_slice %19 {offsets = [8, 0], sizes = [2, 128], strides = [1, 1]} : vector<16x128xf32> to vector<2x128xf32>
    %cst_48 = arith.constant dense<0.000000e+00> : vector<2x128xf32>
    %181 = tpu.matmul %159, %25, %cst_48 {dimension_numbers = #tpu.dot_dimension_numbers<[1], [0], [0], [1], [0, 0, 1, 1], [], []>} : vector<2x32xf32>, vector<32x128xf32>, vector<2x128xf32> -> vector<2x128xf32>
    %182 = arith.addf %180, %181 : vector<2x128xf32>
    %183 = arith.negf %182 : vector<2x128xf32>
    %184 = math.exp %183 : vector<2x128xf32>
    %cst_49 = arith.constant 1.000000e+00 : f32
    %185 = vector.broadcast %cst_49 : f32 to vector<2x128xf32>
    %186 = arith.addf %185, %184 : vector<2x128xf32>
    %187 = arith.divf %185, %186 : vector<2x128xf32>
    %188 = math.tanh %182 : vector<2x128xf32>
    %189 = vector.extract_strided_slice %187 {offsets = [0, 0], sizes = [2, 32], strides = [1, 1]} : vector<2x128xf32> to vector<2x32xf32>
    %190 = vector.extract_strided_slice %187 {offsets = [0, 32], sizes = [2, 32], strides = [1, 1]} : vector<2x128xf32> to vector<2x32xf32>
    %191 = vector.extract_strided_slice %188 {offsets = [0, 64], sizes = [2, 32], strides = [1, 1]} : vector<2x128xf32> to vector<2x32xf32>
    %192 = vector.extract_strided_slice %187 {offsets = [0, 96], sizes = [2, 32], strides = [1, 1]} : vector<2x128xf32> to vector<2x32xf32>
    %193 = arith.mulf %190, %157 : vector<2x32xf32>
    %194 = arith.mulf %189, %191 : vector<2x32xf32>
    %195 = arith.addf %193, %194 : vector<2x32xf32>
    %196 = math.tanh %195 : vector<2x32xf32>
    %197 = arith.mulf %192, %196 : vector<2x32xf32>
    %198 = vector.extract_strided_slice %24 {offsets = [6, 0], sizes = [2, 128], strides = [1, 1]} : vector<16x128xf32> to vector<2x128xf32>
    %cst_50 = arith.constant dense<0.000000e+00> : vector<2x128xf32>
    %199 = tpu.matmul %177, %26, %cst_50 {dimension_numbers = #tpu.dot_dimension_numbers<[1], [0], [0], [1], [0, 0, 1, 1], [], []>} : vector<2x32xf32>, vector<32x128xf32>, vector<2x128xf32> -> vector<2x128xf32>
    %200 = arith.addf %198, %199 : vector<2x128xf32>
    %201 = arith.negf %200 : vector<2x128xf32>
    %202 = math.exp %201 : vector<2x128xf32>
    %cst_51 = arith.constant 1.000000e+00 : f32
    %203 = vector.broadcast %cst_51 : f32 to vector<2x128xf32>
    %204 = arith.addf %203, %202 : vector<2x128xf32>
    %205 = arith.divf %203, %204 : vector<2x128xf32>
    %206 = math.tanh %200 : vector<2x128xf32>
    %207 = vector.extract_strided_slice %205 {offsets = [0, 0], sizes = [2, 32], strides = [1, 1]} : vector<2x128xf32> to vector<2x32xf32>
    %208 = vector.extract_strided_slice %205 {offsets = [0, 32], sizes = [2, 32], strides = [1, 1]} : vector<2x128xf32> to vector<2x32xf32>
    %209 = vector.extract_strided_slice %206 {offsets = [0, 64], sizes = [2, 32], strides = [1, 1]} : vector<2x128xf32> to vector<2x32xf32>
    %210 = vector.extract_strided_slice %205 {offsets = [0, 96], sizes = [2, 32], strides = [1, 1]} : vector<2x128xf32> to vector<2x32xf32>
    %211 = arith.mulf %208, %175 : vector<2x32xf32>
    %212 = arith.mulf %207, %209 : vector<2x32xf32>
    %213 = arith.addf %211, %212 : vector<2x32xf32>
    %214 = math.tanh %213 : vector<2x32xf32>
    %215 = arith.mulf %210, %214 : vector<2x32xf32>
    %c8_52 = arith.constant 8 : index
    %c0_53 = arith.constant 0 : index
    %216 = vector.load %arg17[%c8_52, %c0_53] : memref<16x64xf32, #tpu.memory_space<vmem>>, vector<2x32xf32>
    tpu.vector_store %arg17[%c8_52, %c0_53], %197 {strides = array<i32>} : memref<16x64xf32, #tpu.memory_space<vmem>>, vector<2x32xf32>,
    %c6_54 = arith.constant 6 : index
    %c32_55 = arith.constant 32 : index
    %217 = vector.load %arg17[%c6_54, %c32_55] : memref<16x64xf32, #tpu.memory_space<vmem>>, vector<2x32xf32>
    tpu.vector_store %arg17[%c6_54, %c32_55], %215 {strides = array<i32>} : memref<16x64xf32, #tpu.memory_space<vmem>>, vector<2x32xf32>,
    %218 = vector.extract_strided_slice %19 {offsets = [10, 0], sizes = [2, 128], strides = [1, 1]} : vector<16x128xf32> to vector<2x128xf32>
    %cst_56 = arith.constant dense<0.000000e+00> : vector<2x128xf32>
    %219 = tpu.matmul %197, %25, %cst_56 {dimension_numbers = #tpu.dot_dimension_numbers<[1], [0], [0], [1], [0, 0, 1, 1], [], []>} : vector<2x32xf32>, vector<32x128xf32>, vector<2x128xf32> -> vector<2x128xf32>
    %220 = arith.addf %218, %219 : vector<2x128xf32>
    %221 = arith.negf %220 : vector<2x128xf32>
    %222 = math.exp %221 : vector<2x128xf32>
    %cst_57 = arith.constant 1.000000e+00 : f32
    %223 = vector.broadcast %cst_57 : f32 to vector<2x128xf32>
    %224 = arith.addf %223, %222 : vector<2x128xf32>
    %225 = arith.divf %223, %224 : vector<2x128xf32>
    %226 = math.tanh %220 : vector<2x128xf32>
    %227 = vector.extract_strided_slice %225 {offsets = [0, 0], sizes = [2, 32], strides = [1, 1]} : vector<2x128xf32> to vector<2x32xf32>
    %228 = vector.extract_strided_slice %225 {offsets = [0, 32], sizes = [2, 32], strides = [1, 1]} : vector<2x128xf32> to vector<2x32xf32>
    %229 = vector.extract_strided_slice %226 {offsets = [0, 64], sizes = [2, 32], strides = [1, 1]} : vector<2x128xf32> to vector<2x32xf32>
    %230 = vector.extract_strided_slice %225 {offsets = [0, 96], sizes = [2, 32], strides = [1, 1]} : vector<2x128xf32> to vector<2x32xf32>
    %231 = arith.mulf %228, %195 : vector<2x32xf32>
    %232 = arith.mulf %227, %229 : vector<2x32xf32>
    %233 = arith.addf %231, %232 : vector<2x32xf32>
    %234 = math.tanh %233 : vector<2x32xf32>
    %235 = arith.mulf %230, %234 : vector<2x32xf32>
    %236 = vector.extract_strided_slice %24 {offsets = [4, 0], sizes = [2, 128], strides = [1, 1]} : vector<16x128xf32> to vector<2x128xf32>
    %cst_58 = arith.constant dense<0.000000e+00> : vector<2x128xf32>
    %237 = tpu.matmul %215, %26, %cst_58 {dimension_numbers = #tpu.dot_dimension_numbers<[1], [0], [0], [1], [0, 0, 1, 1], [], []>} : vector<2x32xf32>, vector<32x128xf32>, vector<2x128xf32> -> vector<2x128xf32>
    %238 = arith.addf %236, %237 : vector<2x128xf32>
    %239 = arith.negf %238 : vector<2x128xf32>
    %240 = math.exp %239 : vector<2x128xf32>
    %cst_59 = arith.constant 1.000000e+00 : f32
    %241 = vector.broadcast %cst_59 : f32 to vector<2x128xf32>
    %242 = arith.addf %241, %240 : vector<2x128xf32>
    %243 = arith.divf %241, %242 : vector<2x128xf32>
    %244 = math.tanh %238 : vector<2x128xf32>
    %245 = vector.extract_strided_slice %243 {offsets = [0, 0], sizes = [2, 32], strides = [1, 1]} : vector<2x128xf32> to vector<2x32xf32>
    %246 = vector.extract_strided_slice %243 {offsets = [0, 32], sizes = [2, 32], strides = [1, 1]} : vector<2x128xf32> to vector<2x32xf32>
    %247 = vector.extract_strided_slice %244 {offsets = [0, 64], sizes = [2, 32], strides = [1, 1]} : vector<2x128xf32> to vector<2x32xf32>
    %248 = vector.extract_strided_slice %243 {offsets = [0, 96], sizes = [2, 32], strides = [1, 1]} : vector<2x128xf32> to vector<2x32xf32>
    %249 = arith.mulf %246, %213 : vector<2x32xf32>
    %250 = arith.mulf %245, %247 : vector<2x32xf32>
    %251 = arith.addf %249, %250 : vector<2x32xf32>
    %252 = math.tanh %251 : vector<2x32xf32>
    %253 = arith.mulf %248, %252 : vector<2x32xf32>
    %c10_60 = arith.constant 10 : index
    %c0_61 = arith.constant 0 : index
    %254 = vector.load %arg17[%c10_60, %c0_61] : memref<16x64xf32, #tpu.memory_space<vmem>>, vector<2x32xf32>
    tpu.vector_store %arg17[%c10_60, %c0_61], %235 {strides = array<i32>} : memref<16x64xf32, #tpu.memory_space<vmem>>, vector<2x32xf32>,
    %c4_62 = arith.constant 4 : index
    %c32_63 = arith.constant 32 : index
    %255 = vector.load %arg17[%c4_62, %c32_63] : memref<16x64xf32, #tpu.memory_space<vmem>>, vector<2x32xf32>
    tpu.vector_store %arg17[%c4_62, %c32_63], %253 {strides = array<i32>} : memref<16x64xf32, #tpu.memory_space<vmem>>, vector<2x32xf32>,
    %256 = vector.extract_strided_slice %19 {offsets = [12, 0], sizes = [2, 128], strides = [1, 1]} : vector<16x128xf32> to vector<2x128xf32>
    %cst_64 = arith.constant dense<0.000000e+00> : vector<2x128xf32>
    %257 = tpu.matmul %235, %25, %cst_64 {dimension_numbers = #tpu.dot_dimension_numbers<[1], [0], [0], [1], [0, 0, 1, 1], [], []>} : vector<2x32xf32>, vector<32x128xf32>, vector<2x128xf32> -> vector<2x128xf32>
    %258 = arith.addf %256, %257 : vector<2x128xf32>
    %259 = arith.negf %258 : vector<2x128xf32>
    %260 = math.exp %259 : vector<2x128xf32>
    %cst_65 = arith.constant 1.000000e+00 : f32
    %261 = vector.broadcast %cst_65 : f32 to vector<2x128xf32>
    %262 = arith.addf %261, %260 : vector<2x128xf32>
    %263 = arith.divf %261, %262 : vector<2x128xf32>
    %264 = math.tanh %258 : vector<2x128xf32>
    %265 = vector.extract_strided_slice %263 {offsets = [0, 0], sizes = [2, 32], strides = [1, 1]} : vector<2x128xf32> to vector<2x32xf32>
    %266 = vector.extract_strided_slice %263 {offsets = [0, 32], sizes = [2, 32], strides = [1, 1]} : vector<2x128xf32> to vector<2x32xf32>
    %267 = vector.extract_strided_slice %264 {offsets = [0, 64], sizes = [2, 32], strides = [1, 1]} : vector<2x128xf32> to vector<2x32xf32>
    %268 = vector.extract_strided_slice %263 {offsets = [0, 96], sizes = [2, 32], strides = [1, 1]} : vector<2x128xf32> to vector<2x32xf32>
    %269 = arith.mulf %266, %233 : vector<2x32xf32>
    %270 = arith.mulf %265, %267 : vector<2x32xf32>
    %271 = arith.addf %269, %270 : vector<2x32xf32>
    %272 = math.tanh %271 : vector<2x32xf32>
    %273 = arith.mulf %268, %272 : vector<2x32xf32>
    %274 = vector.extract_strided_slice %24 {offsets = [2, 0], sizes = [2, 128], strides = [1, 1]} : vector<16x128xf32> to vector<2x128xf32>
    %cst_66 = arith.constant dense<0.000000e+00> : vector<2x128xf32>
    %275 = tpu.matmul %253, %26, %cst_66 {dimension_numbers = #tpu.dot_dimension_numbers<[1], [0], [0], [1], [0, 0, 1, 1], [], []>} : vector<2x32xf32>, vector<32x128xf32>, vector<2x128xf32> -> vector<2x128xf32>
    %276 = arith.addf %274, %275 : vector<2x128xf32>
    %277 = arith.negf %276 : vector<2x128xf32>
    %278 = math.exp %277 : vector<2x128xf32>
    %cst_67 = arith.constant 1.000000e+00 : f32
    %279 = vector.broadcast %cst_67 : f32 to vector<2x128xf32>
    %280 = arith.addf %279, %278 : vector<2x128xf32>
    %281 = arith.divf %279, %280 : vector<2x128xf32>
    %282 = math.tanh %276 : vector<2x128xf32>
    %283 = vector.extract_strided_slice %281 {offsets = [0, 0], sizes = [2, 32], strides = [1, 1]} : vector<2x128xf32> to vector<2x32xf32>
    %284 = vector.extract_strided_slice %281 {offsets = [0, 32], sizes = [2, 32], strides = [1, 1]} : vector<2x128xf32> to vector<2x32xf32>
    %285 = vector.extract_strided_slice %282 {offsets = [0, 64], sizes = [2, 32], strides = [1, 1]} : vector<2x128xf32> to vector<2x32xf32>
    %286 = vector.extract_strided_slice %281 {offsets = [0, 96], sizes = [2, 32], strides = [1, 1]} : vector<2x128xf32> to vector<2x32xf32>
    %287 = arith.mulf %284, %251 : vector<2x32xf32>
    %288 = arith.mulf %283, %285 : vector<2x32xf32>
    %289 = arith.addf %287, %288 : vector<2x32xf32>
    %290 = math.tanh %289 : vector<2x32xf32>
    %291 = arith.mulf %286, %290 : vector<2x32xf32>
    %c12_68 = arith.constant 12 : index
    %c0_69 = arith.constant 0 : index
    %292 = vector.load %arg17[%c12_68, %c0_69] : memref<16x64xf32, #tpu.memory_space<vmem>>, vector<2x32xf32>
    tpu.vector_store %arg17[%c12_68, %c0_69], %273 {strides = array<i32>} : memref<16x64xf32, #tpu.memory_space<vmem>>, vector<2x32xf32>,
    %c2_70 = arith.constant 2 : index
    %c32_71 = arith.constant 32 : index
    %293 = vector.load %arg17[%c2_70, %c32_71] : memref<16x64xf32, #tpu.memory_space<vmem>>, vector<2x32xf32>
    tpu.vector_store %arg17[%c2_70, %c32_71], %291 {strides = array<i32>} : memref<16x64xf32, #tpu.memory_space<vmem>>, vector<2x32xf32>,
    %294 = vector.extract_strided_slice %19 {offsets = [14, 0], sizes = [2, 128], strides = [1, 1]} : vector<16x128xf32> to vector<2x128xf32>
    %cst_72 = arith.constant dense<0.000000e+00> : vector<2x128xf32>
    %295 = tpu.matmul %273, %25, %cst_72 {dimension_numbers = #tpu.dot_dimension_numbers<[1], [0], [0], [1], [0, 0, 1, 1], [], []>} : vector<2x32xf32>, vector<32x128xf32>, vector<2x128xf32> -> vector<2x128xf32>
    %296 = arith.addf %294, %295 : vector<2x128xf32>
    %297 = arith.negf %296 : vector<2x128xf32>
    %298 = math.exp %297 : vector<2x128xf32>
    %cst_73 = arith.constant 1.000000e+00 : f32
    %299 = vector.broadcast %cst_73 : f32 to vector<2x128xf32>
    %300 = arith.addf %299, %298 : vector<2x128xf32>
    %301 = arith.divf %299, %300 : vector<2x128xf32>
    %302 = math.tanh %296 : vector<2x128xf32>
    %303 = vector.extract_strided_slice %301 {offsets = [0, 0], sizes = [2, 32], strides = [1, 1]} : vector<2x128xf32> to vector<2x32xf32>
    %304 = vector.extract_strided_slice %301 {offsets = [0, 32], sizes = [2, 32], strides = [1, 1]} : vector<2x128xf32> to vector<2x32xf32>
    %305 = vector.extract_strided_slice %302 {offsets = [0, 64], sizes = [2, 32], strides = [1, 1]} : vector<2x128xf32> to vector<2x32xf32>
    %306 = vector.extract_strided_slice %301 {offsets = [0, 96], sizes = [2, 32], strides = [1, 1]} : vector<2x128xf32> to vector<2x32xf32>
    %307 = arith.mulf %304, %271 : vector<2x32xf32>
    %308 = arith.mulf %303, %305 : vector<2x32xf32>
    %309 = arith.addf %307, %308 : vector<2x32xf32>
    %310 = math.tanh %309 : vector<2x32xf32>
    %311 = arith.mulf %306, %310 : vector<2x32xf32>
    %312 = vector.extract_strided_slice %24 {offsets = [0, 0], sizes = [2, 128], strides = [1, 1]} : vector<16x128xf32> to vector<2x128xf32>
    %cst_74 = arith.constant dense<0.000000e+00> : vector<2x128xf32>
    %313 = tpu.matmul %291, %26, %cst_74 {dimension_numbers = #tpu.dot_dimension_numbers<[1], [0], [0], [1], [0, 0, 1, 1], [], []>} : vector<2x32xf32>, vector<32x128xf32>, vector<2x128xf32> -> vector<2x128xf32>
    %314 = arith.addf %312, %313 : vector<2x128xf32>
    %315 = arith.negf %314 : vector<2x128xf32>
    %316 = math.exp %315 : vector<2x128xf32>
    %cst_75 = arith.constant 1.000000e+00 : f32
    %317 = vector.broadcast %cst_75 : f32 to vector<2x128xf32>
    %318 = arith.addf %317, %316 : vector<2x128xf32>
    %319 = arith.divf %317, %318 : vector<2x128xf32>
    %320 = math.tanh %314 : vector<2x128xf32>
    %321 = vector.extract_strided_slice %319 {offsets = [0, 0], sizes = [2, 32], strides = [1, 1]} : vector<2x128xf32> to vector<2x32xf32>
    %322 = vector.extract_strided_slice %319 {offsets = [0, 32], sizes = [2, 32], strides = [1, 1]} : vector<2x128xf32> to vector<2x32xf32>
    %323 = vector.extract_strided_slice %320 {offsets = [0, 64], sizes = [2, 32], strides = [1, 1]} : vector<2x128xf32> to vector<2x32xf32>
    %324 = vector.extract_strided_slice %319 {offsets = [0, 96], sizes = [2, 32], strides = [1, 1]} : vector<2x128xf32> to vector<2x32xf32>
    %325 = arith.mulf %322, %289 : vector<2x32xf32>
    %326 = arith.mulf %321, %323 : vector<2x32xf32>
    %327 = arith.addf %325, %326 : vector<2x32xf32>
    %328 = math.tanh %327 : vector<2x32xf32>
    %329 = arith.mulf %324, %328 : vector<2x32xf32>
    %c14_76 = arith.constant 14 : index
    %c0_77 = arith.constant 0 : index
    %330 = vector.load %arg17[%c14_76, %c0_77] : memref<16x64xf32, #tpu.memory_space<vmem>>, vector<2x32xf32>
    tpu.vector_store %arg17[%c14_76, %c0_77], %311 {strides = array<i32>} : memref<16x64xf32, #tpu.memory_space<vmem>>, vector<2x32xf32>,
    %c0_78 = arith.constant 0 : index
    %c32_79 = arith.constant 32 : index
    %331 = vector.load %arg17[%c0_78, %c32_79] : memref<16x64xf32, #tpu.memory_space<vmem>>, vector<2x32xf32>
    tpu.vector_store %arg17[%c0_78, %c32_79], %329 {strides = array<i32>} : memref<16x64xf32, #tpu.memory_space<vmem>>, vector<2x32xf32>,
    %c0_80 = arith.constant 0 : index
    %c0_81 = arith.constant 0 : index
    %332 = vector.load %arg17[%c0_80, %c0_81] : memref<16x64xf32, #tpu.memory_space<vmem>>, vector<16x64xf32>
    %c0_82 = arith.constant 0 : index
    %c0_83 = arith.constant 0 : index
    %333 = vector.load %arg10[%c0_82, %c0_83] : memref<64x64xf32, #tpu.memory_space<vmem>>, vector<64x64xf32>
    %cst_84 = arith.constant dense<0.000000e+00> : vector<16x64xf32>
    %334 = tpu.matmul %332, %333, %cst_84 {dimension_numbers = #tpu.dot_dimension_numbers<[1], [0], [0], [1], [0, 0, 1, 1], [], []>} : vector<16x64xf32>, vector<64x64xf32>, vector<16x64xf32> -> vector<16x64xf32>
    %c0_85 = arith.constant 0 : index
    %c0_86 = arith.constant 0 : index
    %335 = vector.load %arg11[%c0_85, %c0_86] : memref<1x64xf32, #tpu.memory_space<vmem>>, vector<1x64xf32>
    %336 = vector.broadcast %335 : vector<1x64xf32> to vector<16x64xf32>
    %337 = arith.addf %334, %336 : vector<16x64xf32>
    %cst_87 = arith.constant 0.000000e+00 : f32
    %338 = vector.broadcast %cst_87 : f32 to vector<16x64xf32>
    %339 = arith.maximumf %337, %338 : vector<16x64xf32>
    %c0_88 = arith.constant 0 : index
    %c0_89 = arith.constant 0 : index
    %340 = vector.load %arg12[%c0_88, %c0_89] : memref<64x64xf32, #tpu.memory_space<vmem>>, vector<64x64xf32>
    %cst_90 = arith.constant dense<0.000000e+00> : vector<16x64xf32>
    %341 = tpu.matmul %339, %340, %cst_90 {dimension_numbers = #tpu.dot_dimension_numbers<[1], [0], [0], [1], [0, 0, 1, 1], [], []>} : vector<16x64xf32>, vector<64x64xf32>, vector<16x64xf32> -> vector<16x64xf32>
    %c0_91 = arith.constant 0 : index
    %c0_92 = arith.constant 0 : index
    %342 = vector.load %arg13[%c0_91, %c0_92] : memref<1x64xf32, #tpu.memory_space<vmem>>, vector<1x64xf32>
    %343 = vector.broadcast %342 : vector<1x64xf32> to vector<16x64xf32>
    %344 = arith.addf %341, %343 : vector<16x64xf32>
    %cst_93 = arith.constant 0.000000e+00 : f32
    %345 = vector.broadcast %cst_93 : f32 to vector<16x64xf32>
    %346 = arith.maximumf %344, %345 : vector<16x64xf32>
    %c0_94 = arith.constant 0 : index
    %c0_95 = arith.constant 0 : index
    %347 = vector.load %arg14[%c0_94, %c0_95] : memref<64x8xf32, #tpu.memory_space<vmem>>, vector<64x8xf32>
    %cst_96 = arith.constant dense<0.000000e+00> : vector<16x8xf32>
    %348 = tpu.matmul %346, %347, %cst_96 {dimension_numbers = #tpu.dot_dimension_numbers<[1], [0], [0], [1], [0, 0, 1, 1], [], []>} : vector<16x64xf32>, vector<64x8xf32>, vector<16x8xf32> -> vector<16x8xf32>
    %c0_97 = arith.constant 0 : index
    %c0_98 = arith.constant 0 : index
    %349 = vector.load %arg15[%c0_97, %c0_98] : memref<1x8xf32, #tpu.memory_space<vmem>>, vector<1x8xf32>
    %350 = vector.broadcast %349 : vector<1x8xf32> to vector<16x8xf32>
    %351 = arith.addf %348, %350 : vector<16x8xf32>
    %c0_99 = arith.constant 0 : index
    %c0_100 = arith.constant 0 : index
    %352 = vector.load %arg16[%c0_99, %c0_100] : memref<16x8xf32, #tpu.memory_space<vmem>>, vector<16x8xf32>
    tpu.vector_store %arg16[%c0_99, %c0_100], %351 {strides = array<i32>} : memref<16x8xf32, #tpu.memory_space<vmem>>, vector<16x8xf32>,
    return
  }
}

</mosaic_0001>

<bundles_post_ra>
// kernel: sequence_labeler_forward.1
= control target key start
LH: loop header
LB: loop body
LE: loop exit
PB: predicated region body
PF: predicated region fallthrough
CT: control target
= control target key end

     0   :  { %s4202_s0 = inlined_call_operand.vmem [shape: s32[16,1], index: 0, kind: input, shape index: {}]   ;;  %s4203_s1 = inlined_call_operand.vmem [shape: f32[100,32], index: 1, kind: input, shape index: {}]   ;;  %s4204_s2 = inlined_call_operand.vmem [shape: f32[32,32], index: 2, kind: input, shape index: {}]   ;;  %s4205_s3 = inlined_call_operand.vmem [shape: f32[1,32], index: 3, kind: input, shape index: {}]   ;;  %s4206_s4 = inlined_call_operand.vmem [shape: f32[32,128], index: 4, kind: input, shape index: {}]   ;;  %s4207_s5 = inlined_call_operand.vmem [shape: f32[32,128], index: 5, kind: input, shape index: {}]   ;;  %s4208_s6 = inlined_call_operand.hbm [shape: f32[1,128], index: 6, kind: input, shape index: {}]   ;;  %s4209_s7 = inlined_call_operand.vmem [shape: f32[32,128], index: 7, kind: input, shape index: {}]   ;;  %s4210_s8 = inlined_call_operand.hbm [shape: f32[32,128], index: 8, kind: input, shape index: {}]   ;;  %s4211_s9 = inlined_call_operand.hbm [shape: f32[1,128], index: 9, kind: input, shape index: {}]   ;;  %s4212_s10 = inlined_call_operand.vmem [shape: f32[64,64], index: 10, kind: input, shape index: {}]   ;;  %s4213_s11 = inlined_call_operand.hbm [shape: f32[1,64], index: 11, kind: input, shape index: {}]   ;;  %s4214_s12 = inlined_call_operand.vmem [shape: f32[64,64], index: 12, kind: input, shape index: {}]   ;;  %s4215_s13 = inlined_call_operand.vmem [shape: f32[1,64], index: 13, kind: input, shape index: {}]   ;;  %s4216_s14 = inlined_call_operand.vmem [shape: f32[64,8], index: 14, kind: input, shape index: {}]   ;;  %s4217_s15 = inlined_call_operand.vmem [shape: f32[1,8], index: 15, kind: input, shape index: {}]   ;;  %s4218_s16 = inlined_call_operand.hbm [shape: f32[16,8], index: 16, kind: output, shape index: {}]  }
   0x1   :  { %4221 = sst [smem:[#allocation16_spill]] %s4202_s0 }
   0x2   :  { %4222 = sst [smem:[#allocation17_spill]] %s4218_s16 }
   0x3   :  { %21 = vsyncpa [#allocation4], 0 }
   0x4   :  { %22 = vsyncpa [#allocation7], 0 }
   0x5   :  { %23 = vsyncpa [#allocation10], 0 }
   0x6   :  { %24 = vsyncpa [#allocation5], 0  ;;  %s3511_s21 = smov [#allocation6]   ;;  %s3393_s25 = scalar_lea.hbm %s4210_s8, 512 }
   0x7   :  { %s54_s22 = sshll.u32 %s3511_s21, 4  ;;  %p3394_p0 = scmp.ne.s32.totalorder %s4210_s8, %s3393_s25  ;;  %s55_s22 = int_to_ptr.vmem [resolvable:$true] %s54_s22 }
   0x8   :  { %p3397_p1 = scmp.lt.u32.totalorder %s3393_s25, %s4210_s8 }
   0xa   :  { %p3399_p2 = pnand %p3397_p1, %p3394_p0 }
   0xc   :  { %3402 = shalt.err (!%p3399_p2)
}
   0xd   :  { %s3403_s30 = scalar_lea.vmem %s55_s22, 512  ;;  %p3408_p4 = scmp.lt.s32.totalorder %s55_s22, %s55_s22 }
   0xe   :  { %p3404_p3 = scmp.ne.s32.totalorder %s55_s22, %s3403_s30  ;;  %p3409_p5 = scmp.lt.s32.totalorder %s3403_s30, %s3403_s30 }
  0x10   :  { %p3410_p6 = por %p3409_p5, %p3408_p4 }
  0x12   :  { %p3411_p7 = pnand %p3410_p6, %p3404_p3 }
  0x14   :  { %3414 = shalt.err (!%p3411_p7)
}
  0x15   :  { %s3512_s0 = smov 128   ;;  %s3513_s17 = smov 8  }
  0x16   :  { %60 = dma.hbm_to_vmem [thread:$0]  %s4210_s8, 512, %s55_s22, [#allocation7], %s3512_s0, %s3512_s0, %s3513_s17  }
  0x17   :  { %s3514_s20 = smov [#allocation3]   ;;  %s3515_s23 = smov [#allocation8]  }
  0x18   :  { %s43_s21 = sshll.u32 %s3514_s20, 4  ;;  %s67_s24 = sshll.u32 %s3515_s23, 4  ;;  %s44_s21 = int_to_ptr.vmem [resolvable:$true] %s43_s21  ;;  %s68_s24 = int_to_ptr.vmem [resolvable:$true] %s67_s24 }
  0x19   :  { %s3415_s27 = scalar_lea.hbm %s4208_s6, 16 }
  0x1a   :  { %p3416_p8 = scmp.ne.s32.totalorder %s4208_s6, %s3415_s27  ;;  %p3419_p9 = scmp.lt.u32.totalorder %s3415_s27, %s4208_s6 }
  0x1c   :  { %p3421_p10 = pnand %p3419_p9, %p3416_p8 }
  0x1e   :  { %3424 = shalt.err (!%p3421_p10)
}
  0x1f   :  { %s3425_s8 = scalar_lea.vmem %s44_s21, 16  ;;  %s3429_s22 = scalar_lea.vmem %s44_s21, 32 }
  0x20   :  { %p3426_p11 = scmp.ne.s32.totalorder %s44_s21, %s3425_s8  ;;  %p3430_p12 = scmp.lt.s32.totalorder %s44_s21, %s44_s21 }
  0x21   :  { %p3431_p13 = scmp.lt.s32.totalorder %s3429_s22, %s3425_s8 }
  0x23   :  { %p3432_p0 = por %p3431_p13, %p3430_p12 }
  0x25   :  { %p3433_p1 = pnand %p3432_p0, %p3426_p11 }
  0x27   :  { %3436 = shalt.err (!%p3433_p1)
}
  0x28   :  { %46 = dma.hbm_to_vmem [thread:$0]  %s4208_s6, 16, %s44_s21, [#allocation4]  }
  0x29   :  { %s3437_s16 = scalar_lea.hbm %s4211_s9, 16 }
  0x2a   :  { %p3438_p2 = scmp.ne.s32.totalorder %s4211_s9, %s3437_s16  ;;  %p3441_p3 = scmp.lt.u32.totalorder %s3437_s16, %s4211_s9 }
  0x2c   :  { %p3443_p4 = pnand %p3441_p3, %p3438_p2 }
  0x2e   :  { %3446 = shalt.err (!%p3443_p4)
}
  0x2f   :  { %s3447_s29 = scalar_lea.vmem %s68_s24, 16  ;;  %s3451_s30 = scalar_lea.vmem %s68_s24, 32 }
  0x30   :  { %p3448_p5 = scmp.ne.s32.totalorder %s68_s24, %s3447_s29  ;;  %p3452_p6 = scmp.lt.s32.totalorder %s68_s24, %s68_s24 }
  0x31   :  { %p3453_p7 = scmp.lt.s32.totalorder %s3451_s30, %s3447_s29 }
  0x33   :  { %p3454_p8 = por %p3453_p7, %p3452_p6 }
  0x35   :  { %p3455_p9 = pnand %p3454_p8, %p3448_p5 }
  0x37   :  { %3458 = shalt.err (!%p3455_p9)
}
  0x38   :  { %70 = dma.hbm_to_vmem [thread:$0]  %s4211_s9, 16, %s68_s24, [#allocation7]  }
  0x39   :  { %s3516_s8 = smov [#allocation9]   ;;  %s3459_s20 = scalar_lea.hbm %s4213_s11, 16 }
  0x3a   :  { %s79_s22 = sshll.u32 %s3516_s8, 4  ;;  %p3460_p10 = scmp.ne.s32.totalorder %s4213_s11, %s3459_s20  ;;  %s80_s22 = int_to_ptr.vmem [resolvable:$true] %s79_s22 }
  0x3b   :  { %p3463_p11 = scmp.lt.u32.totalorder %s3459_s20, %s4213_s11 }
  0x3d   :  { %p3465_p12 = pnand %p3463_p11, %p3460_p10 }
  0x3f   :  { %3468 = shalt.err (!%p3465_p12)
}
  0x40   :  { %s3469_s27 = scalar_lea.vmem %s80_s22, 16  ;;  %s3473_s9 = scalar_lea.vmem %s80_s22, 32 }
  0x41   :  { %p3470_p13 = scmp.ne.s32.totalorder %s80_s22, %s3469_s27  ;;  %p3474_p0 = scmp.lt.s32.totalorder %s80_s22, %s80_s22 }
  0x42   :  { %p3475_p1 = scmp.lt.s32.totalorder %s3473_s9, %s3469_s27 }
  0x44   :  { %p3476_p2 = por %p3475_p1, %p3474_p0 }
  0x46   :  { %p3477_p3 = pnand %p3476_p2, %p3470_p13 }
  0x48   :  { %3480 = shalt.err (!%p3477_p3)
}
  0x49   :  { %82 = dma.hbm_to_vmem [thread:$0]  %s4213_s11, 16, %s80_s22, [#allocation10]  }
  0x4a   :  { %3503 = dma.done.wait [#allocation4], 16  }
  0x4b   :  { %3504 = vsyncadd [#allocation4], 4294967280 }
  0x4c   :  { %3505 = dma.done.wait [#allocation7], 528  }
  0x4d   :  { %3506 = vsyncadd [#allocation7], 4294966768 }
  0x4e   :  { %3507 = dma.done.wait [#allocation10], 16  }
  0x4f   :  { %3508 = vsyncadd [#allocation10], 4294967280  ;;  %v3517_v0 = vmov 0   ;;  %s4223_s6 = sld [smem:[#allocation16_spill]]  ;;  %v119_v2 = vld [vmem:[%s4203_s1] sm:$0xff]  ;;  %v120_v3 = vld [vmem:[%s4203_s1 + $0x8] sm:$0xff]  ;;  %v105_v25 = vlaneseq }
  0x50   :  { %3264 = vset.pattern.permute.xlu0 %v3517_v0  ;;  %v121_v4 = vld [vmem:[%s4203_s1 + $0x10] sm:$0xff]  ;;  %v122_v5 = vld [vmem:[%s4203_s1 + $0x18] sm:$0xff]  ;;  %v3059_v7 = vpack.c.bf16 %v120_v3, %v119_v2  ;;  %v123_v9 = vld [vmem:[%s4203_s1 + $0x20] sm:$0xff]  ;;  %vm139_vm0 = vcmask 1043456   ;;  %vm132_vm1 = vcmask 818176   ;;  %v3518_v28 = vmov 0.0  }
  0x51   :  { %v3063_v8 = vpack.c.bf16 %v122_v5, %v121_v4  ;;  %v124_v10 = vld [vmem:[%s4203_s1 + $0x28] sm:$0xff]  ;;  %v125_v12 = vld [vmem:[%s4203_s1 + $0x30] sm:$0xff]  ;;  %v126_v13 = vld [vmem:[%s4203_s1 + $0x38] sm:$0xff]  ;;  %v106_v26 = vand.u32 127, %v105_v25  ;;  %vm229_vm4 = vcmask 261120   ;;  %v3519_v48 = vmov 0.0|0.0  }
  0x52   :  { %3060 = vmatprep.subr.bf16.mxu0 %v3059_v7  ;;  %v3067_v11 = vpack.c.bf16 %v124_v10, %v123_v9  ;;  %v3071_v14 = vpack.c.bf16 %v126_v13, %v125_v12  ;;  %v127_v15 = vld [vmem:[%s4203_s1 + $0x40] sm:$0xff]  ;;  %v128_v16 = vld [vmem:[%s4203_s1 + $0x48] sm:$0xff]  ;;  %v129_v18 = vld [vmem:[%s4203_s1 + $0x50] sm:$0xff]  ;;  %vm3520_vm5 = vmmov 0   ;;  %s3522_s18 = smov 32   ;;  %vm699_vm6 = vcmask 254976  }
  0x53   :  { %3062 = vmatpush3.bf16.msra.mxu0 %v3059_v7  ;;  %v3075_v17 = vpack.c.bf16 %v128_v16, %v127_v15  ;;  %v130_v19 = vld [vmem:[%s4203_s1 + $0x58] sm:$0xff]  ;;  %v131_v21 = vld [vmem:[%s4203_s1 + $0x60] sm:$0xf]  ;;  %v219_v23 = vld [vmem:[%s4204_s2 + $0x8] sm:$0xff]  ;;  %vm920_vm7 = vcmask 257026   ;;  %vm1365_vm8 = vcmask 261126  }
  0x54   :  { %3064 = vmatprep.subr.bf16.mxu0 %v3063_v8  ;;  %v3079_v20 = vpack.c.bf16 %v130_v19, %v129_v18  ;;  %v218_v22 = vld [vmem:[%s4204_s2] sm:$0xff]  ;;  %v220_v30 = vld [vmem:[%s4204_s2 + $0x10] sm:$0xff]  ;;  %v221_v31 = vld [vmem:[%s4204_s2 + $0x18] sm:$0xff]  ;;  %vm1144_vm9 = vcmask 259076   ;;  %vm926_vm10 = vcmask 521476   ;;  %vm705_vm11 = vcmask 523526  }
  0x55   :  { %v103_v1 = vld [vmem:[%s4223_s6] sm:$0xff]  ;;  %v104_v6 = vld [vmem:[%s4223_s6 + $0x8] sm:$0xff]  ;;  %v3083_v24 = vpack.c.bf16 %v219_v23, %v218_v22  ;;  %v3087_v33 = vpack.c.bf16 %v221_v31, %v220_v30  ;;  %v315_v40 = vld [vmem:[%s4206_s4 + $0x10] sm:$0xff]  ;;  %vm1371_vm12 = vcmask 517376   ;;  %vm1150_vm13 = vcmask 519426  }
  0x56   :  { %108 = vperm.xlu0 %3264, %v103_v1   ;;  %v313_v35 = vld [vmem:[%s4206_s4] sm:$0xff]  ;;  %v314_v36 = vld [vmem:[%s4206_s4 + $0x8] sm:$0xff]  ;;  %v316_v41 = vld [vmem:[%s4206_s4 + $0x18] sm:$0xff]  ;;  %vm2268_vm14 = vcmask 523264   ;;  %vm2546_vm15 = vcmask 64512  }
  0x57   :  { %3066 = vmatpush3.bf16.msra.mxu0 %v3063_v8  ;;  %v3091_v37 = vpack.c.bf16 %v314_v36, %v313_v35  ;;  %v3095_v42 = vpack.c.bf16 %v316_v41, %v315_v40  ;;  %v405_v43 = vld [vmem:[%s4209_s7] sm:$0xff]  ;;  %v406_v44 = vld [vmem:[%s4209_s7 + $0x8] sm:$0xff]  ;;  %v495_v46 = vld [vmem:[#allocation6] sm:$0xff] }
  0x58   :  { %3068 = vmatprep.subr.bf16.mxu0 %v3067_v11  ;;  %v3099_v45 = vpack.c.bf16 %v406_v44, %v405_v43  ;;  %v496_v47 = vld [vmem:[#allocation6 + $0x8] sm:$0xff]  ;;  %v497_v50 = vld [vmem:[#allocation6 + $0x10] sm:$0xff]  ;;  %v498_v51 = vld [vmem:[#allocation6 + $0x18] sm:$0xff] }
  0x59   :  { %3092 = vmatprep.subr.bf16.mxu1 %v3091_v37  ;;  %v3740_v49 = vpack.c.bf16 %v496_v47, %v495_v46  ;;  %v3744_v52 = vpack.c.bf16 %v498_v51, %v497_v50  ;;  %v2573_v53 = vld [vmem:[%s4205_s3] ss:$0 sm:$0xff]  ;;  %v407_v58 = vld [vmem:[%s4209_s7 + $0x10] sm:$0xff]  ;;  %v408_v59 = vld [vmem:[%s4209_s7 + $0x18] sm:$0xff] }
  0x5a   :  { %111 = vperm.xlu0 %3264, %v104_v6   ;;  %3094 = vmatpush3.bf16.msra.mxu1 %v3091_v37  ;;  %v3103_v62 = vpack.c.bf16 %v408_v59, %v407_v58  ;;  %v491_v63 = vld [vmem:[%s4207_s5] sm:$0xff]  ;;  %v492_v0 = vld [vmem:[%s4207_s5 + $0x8] sm:$0xff]  ;;  %v493_v2 = vld [vmem:[%s4207_s5 + $0x10] sm:$0xff] }
  0x5b   :  { %3070 = vmatpush3.bf16.msra.mxu0 %v3067_v11  ;;  %3096 = vmatprep.subr.bf16.mxu1 %v3095_v42  ;;  %v3775_v1 = vpack.c.bf16 %v492_v0, %v491_v63  ;;  %v494_v3 = vld [vmem:[%s4207_s5 + $0x18] sm:$0xff]  ;;  %v2576_v7 = vld [vmem:[#allocation3] ss:$0 sm:$0xff]  ;;  %v2579_v11 = vld [vmem:[#allocation8] ss:$0 sm:$0xff]  ;;  %s3521_s5 = smov 64  }
  0x5c   :  { %3072 = vmatprep.subr.bf16.mxu0 %v3071_v14  ;;  %v3786_v4 = vpack.c.bf16 %v494_v3, %v493_v2 }
  0x5e   :  { %3098 = vmatpush3.bf16.msra.mxu1 %v3095_v42 }
  0x5f   :  { %3074 = vmatpush3.bf16.msra.mxu0 %v3071_v14  ;;  %3100 = vmatprep.subr.bf16.mxu1 %v3099_v45 }
  0x60   :  { %3076 = vmatprep.subr.bf16.mxu0 %v3075_v17 }
  0x63   :  { %3078 = vmatpush3.bf16.msra.mxu0 %v3075_v17 }
  0x64   :  { %3080 = vmatprep.subr.bf16.mxu0 %v3079_v20 }
  0x67   :  { %3082 = vmatpush3.bf16.msra.mxu0 %v3079_v20 }
  0x68   :  { %2788 = vmatprep.subr.msk.mxu0 %vm139_vm0, %v131_v21 }
  0x6b   :  { %2789 = vmatpush3.msk.msra.mxu0 %vm139_vm0, %v131_v21 }
  0x6c   :  { %3084 = vmatprep.subr.bf16.mxu0 %v3083_v24 }
  0xd5   :  { %v109_v27 = vpop.permute.xlu0 %108 }
  0xd6   :  { %vm113_vm2 = vcmp.eq.s32.totalorder %v106_v26, %v109_v27 }
  0xd7   :  { %v2568_v29 = vsel %vm113_vm2, 1.0, %v3518_v28 }
  0xd8   :  { %2790 = vmatprep.mubr.msk.f32.mxu0 %vm132_vm1, %v2568_v29 }
  0xd9   :  { %v112_v32 = vpop.permute.xlu0 %111 }
  0xda   :  { %vm114_vm3 = vcmp.eq.s32.totalorder %v106_v26, %v112_v32 }
  0xdb   :  { %v2569_v34 = vsel %vm114_vm3, 1.0, %v3518_v28 }
  0xdc   :  { %2791 = vmatmul.mubr.msk.f32.vlgmr.msra.gmra.mrb[0].mxu0 %vm132_vm1, %v2569_v34 }
  0xdd   :  { %3086 = vmatpush3.bf16.msra.mxu0 %v3083_v24 }
  0xde   :  { %3088 = vmatprep.subr.bf16.mxu0 %v3087_v33 }
  0xe1   :  { %3090 = vmatpush3.bf16.msra.mxu0 %v3087_v33 }
  0xe2   :  { %3113 = vmatprep.subr.bf16.mxu0 %v3519_v48 }
 0x1af   :  { %v2792_v38 = vpop.f32.mrb[0].mxu0 }
 0x1b0   :  { %v209_v39 = vpop.f32.mrb[1].mxu0 }
 0x1b1   :  { %2801 = vmatprep.mubr.msk.f32.mxu0 %vm229_vm4, %v209_v39 }
 0x1b2   :  { %2802 = vmatmul.mubr.msk.f32.vlgmr.msra.gmra.mrb[2].mxu0 %vm229_vm4, %v2792_v38 }
 0x1b3   :  { %3115 = vmatpush3.bf16.msra.mxu0 %v3740_v49  ;;  %2845 = vmatprep.mubr.msk.f32.mxu0 %vm3520_vm5, %v3518_v28 }
 0x1b4   :  { %3116 = vmatprep.subr.bf16.mxu0 %v3519_v48 }
 0x1b7   :  { %3118 = vmatpush3.bf16.msra.mxu0 %v3744_v52 }
 0x1b8   :  { %3125 = vmatprep.subr.bf16.mxu0 %v3519_v48 }
 0x1ba   :  { %2846 = vmatmul.mubr.f32.vlgmr.msra.gmra.mrb[4].mxu0 %v3518_v28 }
 0x1bb   :  { %3127 = vmatpush3.bf16.msra.mxu0 %v3740_v49  ;;  %2867 = vmatprep.mubr.msk.f32.mxu0 %vm3520_vm5, %v3518_v28 }
 0x1bc   :  { %3128 = vmatprep.subr.bf16.mxu0 %v3519_v48 }
 0x1bf   :  { %3130 = vmatpush3.bf16.msra.mxu0 %v3744_v52 }
 0x1c0   :  { %3137 = vmatprep.subr.bf16.mxu0 %v3519_v48 }
 0x285   :  { %v2803_v54 = vpop.f32.mrb[2].mxu0 }
 0x286   :  { %v308_v55 = vadd.f32 %v2803_v54, %v2573_v53  ;;  %v302_v56 = vpop.f32.mrb[3].mxu0 }
 0x287   :  { %v303_v57 = vadd.f32 %v2573_v53, %v302_v56 }
 0x288   :  { %v312_v61 = vmax.f32 %v308_v55, 0.0 }
 0x289   :  { %v311_v60 = vmax.f32 %v303_v57, 0.0 }
 0x28b   :  { %2812 = vmatprep.mubr.msk.f32.mxu1 %vm229_vm4, %v311_v60 }
 0x28c   :  { %2813 = vmatmul.mubr.msk.f32.vlgmr.msra.gmra.mrb[0].mxu1 %vm229_vm4, %v312_v61 }
 0x28d   :  { %3102 = vmatpush3.bf16.msra.mxu1 %v3099_v45  ;;  %2823 = vmatprep.mubr.msk.f32.mxu1 %vm229_vm4, %v311_v60  ;;  %v663_v5 = vpop.f32.mrb[4].mxu0 }
 0x28e   :  { %3104 = vmatprep.subr.bf16.mxu1 %v3103_v62  ;;  %v2847_v6 = vpop.f32.mrb[5].mxu0  ;;  %v668_v12 = vrot.slane %v663_v5, 2 }
 0x291   :  { %3106 = vmatpush3.bf16.msra.mxu1 %v3103_v62 }
 0x292   :  { %3107 = vmatprep.subr.bf16.mxu1 %v3519_v48 }
 0x294   :  { %2824 = vmatmul.mubr.msk.f32.vlgmr.msra.gmra.mrb[2].mxu1 %vm229_vm4, %v312_v61 }
 0x295   :  { %3109 = vmatpush3.bf16.msra.mxu1 %v3775_v1  ;;  %2834 = vmatprep.mubr.msk.f32.mxu1 %vm3520_vm5, %v3518_v28 }
 0x296   :  { %3110 = vmatprep.subr.bf16.mxu1 %v3519_v48 }
 0x299   :  { %3112 = vmatpush3.bf16.msra.mxu1 %v3786_v4 }
 0x29a   :  { %3119 = vmatprep.subr.bf16.mxu1 %v3519_v48 }
 0x29c   :  { %2835 = vmatmul.mubr.f32.vlgmr.msra.gmra.mrb[4].mxu1 %v3518_v28 }
 0x29d   :  { %3121 = vmatpush3.bf16.msra.mxu1 %v3775_v1  ;;  %2856 = vmatprep.mubr.msk.f32.mxu1 %vm3520_vm5, %v3518_v28 }
 0x29e   :  { %3122 = vmatprep.subr.bf16.mxu1 %v3519_v48 }
 0x2a1   :  { %3124 = vmatpush3.bf16.msra.mxu1 %v3786_v4 }
 0x2a2   :  { %3131 = vmatprep.subr.bf16.mxu1 %v3519_v48 }
 0x35f   :  { %v2814_v8 = vpop.f32.mrb[0].mxu1 }
 0x360   :  { %v3800_v9 = vadd.f32 %v2814_v8, %v2576_v7  ;;  %v396_v10 = vpop.f32.mrb[1].mxu1 }
 0x361   :  { %v3807_v18 = vadd.f32 %v2576_v7, %v396_v10 }
 0x367   :  { %v2825_v13 = vpop.f32.mrb[2].mxu1 }
 0x368   :  { %v3802_v14 = vadd.f32 %v2825_v13, %v2579_v11  ;;  %v482_v15 = vpop.f32.mrb[3].mxu1 }
 0x369   :  { %v3804_v16 = vadd.f32 %v2579_v11, %v482_v15 }
 0x36a   :  { %v670_v17 = vadd.f32 %v668_v12, %v3802_v14 }
 0x36c   :  { %3265 = vtanh.f32 %v670_v17  ;;  %v2583_v24 = vmul.f32 -1.442695, %v670_v17 }
 0x36f   :  { %v568_v19 = vpop.f32.mrb[4].mxu1 }
 0x370   :  { %v572_v20 = vadd.f32 %v568_v19, %v3807_v18  ;;  %v2836_v21 = vpop.f32.mrb[5].mxu1 }
 0x372   :  { %3267 = vtanh.f32 %v572_v20  ;;  %v2582_v25 = vmul.f32 -1.442695, %v572_v20 }
 0x373   :  { %3269 = vpow2.f32 %v2583_v24 }
 0x374   :  { %3271 = vpow2.f32 %v2582_v25 }
 0x376   :  { %v3266_v22 = vpop.eup %3265 }
 0x377   :  { %680 = vrot.lane.b32.xlu1 %v3266_v22, %s3521_s5 }
 0x37c   :  { %v3268_v23 = vpop.eup %3267 }
 0x37d   :  { %582 = vrot.lane.b32.xlu1 %v3268_v23, %s3521_s5  ;;  %v3270_v26 = vpop.eup %3269 }
 0x37e   :  { %v674_v27 = vadd.f32 1.0, %v3270_v26  ;;  %v3272_v29 = vpop.eup %3271 }
 0x37f   :  { %v576_v30 = vadd.f32 1.0, %v3272_v29 }
 0x380   :  { %3273 = vrcp.f32 %v674_v27 }
 0x381   :  { %3275 = vrcp.f32 %v576_v30 }
 0x38a   :  { %v3274_v31 = vpop.eup %3273 }
 0x38b   :  { %v3276_v34 = vpop.eup %3275  ;;  %v678_v37 = vmul.f32 0.0, %v3274_v31 }
 0x38c   :  { %v580_v40 = vmul.f32 0.0, %v3276_v34 }
 0x3e9   :  { %v681_v32 = vpop.permute.xlu1 %680 }
 0x3ea   :  { %v683_v33 = vmul.f32 %v3274_v31, %v681_v32 }
 0x3ec   :  { %685 = vrot.lane.b32.xlu0 %v683_v33, %s3522_s18 }
 0x3ef   :  { %v583_v35 = vpop.permute.xlu1 %582 }
 0x3f0   :  { %v585_v36 = vmul.f32 %v3276_v34, %v583_v35 }
 0x3f2   :  { %587 = vrot.lane.b32.xlu1 %v585_v36, %s3522_s18 }
 0x45e   :  { %v686_v38 = vpop.permute.xlu0 %685 }
 0x45f   :  { %v3814_v39 = vadd.f32 %v686_v38, %v678_v37 }
 0x461   :  { %3277 = vtanh.f32 %v3814_v39  ;;  %v897_v19 = vrot.slane %v3814_v39, 2 }
 0x464   :  { %v588_v41 = vpop.permute.xlu1 %587 }
 0x465   :  { %v3817_v42 = vadd.f32 %v588_v41, %v580_v40 }
 0x467   :  { %3279 = vtanh.f32 %v3817_v42  ;;  %v791_v22 = vrot.slane %v3817_v42, 6 }
 0x46b   :  { %v3278_v43 = vpop.eup %3277 }
 0x46c   :  { %691 = vrot.lane.b32.xlu0 %v3278_v43, %s3521_s5 }
 0x471   :  { %v3280_v44 = vpop.eup %3279 }
 0x472   :  { %593 = vrot.lane.b32.xlu1 %v3280_v44, %s3521_s5 }
 0x4de   :  { %v692_v45 = vpop.permute.xlu0 %691 }
 0x4df   :  { %v3822_v46 = vmul.f32 %v3274_v31, %v692_v45 }
 0x4e1   :  { %v810_v47 = vrot.slane %v3822_v46, 6 }
 0x4e3   :  { %811 = vrot.lane.b32.xlu1 %v810_v47, %s3522_s18 }
 0x4e4   :  { %v594_v50 = vpop.permute.xlu1 %593 }
 0x4e5   :  { %v596_v51 = vmul.f32 %v3276_v34, %v594_v50 }
 0x4e7   :  { %696 = vrot.lane.b32.xlu0 %v596_v51, %s3522_s18 }
 0x555   :  { %v812_v53 = vpop.permute.xlu1 %811 }
 0x556   :  { %2868 = vmatmul.mubr.msk.f32.vlgmr.msra.gmra.mrb[6].mxu0 %vm229_vm4, %v812_v53 }
 0x557   :  { %3139 = vmatpush3.bf16.msra.mxu0 %v3740_v49  ;;  %2889 = vmatprep.mubr.msk.f32.mxu0 %vm3520_vm5, %v3518_v28 }
 0x558   :  { %3140 = vmatprep.subr.bf16.mxu0 %v3519_v48 }
 0x559   :  { %v697_v54 = vpop.permute.xlu0 %696 }
 0x55a   :  { %700 = vst.msk [vmem:[#allocation2] sm:$0x3] %vm699_vm6, %v697_v54  ;;  %2857 = vmatmul.mubr.msk.f32.vlgmr.msra.gmra.mrb[6].mxu1 %vm229_vm4, %v697_v54 }
 0x55b   :  { %3133 = vmatpush3.bf16.msra.mxu1 %v3775_v1  ;;  %3142 = vmatpush3.bf16.msra.mxu0 %v3744_v52 }
 0x55c   :  { %3134 = vmatprep.subr.bf16.mxu1 %v3519_v48  ;;  %2878 = vmatprep.mubr.msk.f32.mxu1 %vm3520_vm5, %v3518_v28 }
 0x55d   :  { %3149 = vmatprep.subr.bf16.mxu0 %v3519_v48 }
 0x55f   :  { %3136 = vmatpush3.bf16.msra.mxu1 %v3786_v4 }
 0x560   :  { %3143 = vmatprep.subr.bf16.mxu1 %v3519_v48 }
 0x629   :  { %v881_v55 = vpop.f32.mrb[6].mxu0 }
 0x62a   :  { %v886_v56 = vrot.slane %v881_v55, 4  ;;  %v2869_v57 = vpop.f32.mrb[7].mxu0 }
 0x62c   :  { %v888_v58 = vadd.f32 %v886_v56, %v3802_v14 }
 0x62d   :  { %v775_v59 = vpop.f32.mrb[6].mxu1 }
 0x62e   :  { %3281 = vtanh.f32 %v888_v58  ;;  %v780_v60 = vrot.slane %v775_v59, 6  ;;  %v2858_v61 = vpop.f32.mrb[7].mxu1  ;;  %v2587_v2 = vmul.f32 -1.442695, %v888_v58 }
 0x630   :  { %v782_v62 = vadd.f32 %v780_v60, %v3807_v18 }
 0x632   :  { %3283 = vtanh.f32 %v782_v62  ;;  %v2585_v3 = vmul.f32 -1.442695, %v782_v62 }
 0x633   :  { %3285 = vpow2.f32 %v2587_v2 }
 0x634   :  { %3287 = vpow2.f32 %v2585_v3 }
 0x638   :  { %v3282_v63 = vpop.eup %3281 }
 0x639   :  { %901 = vrot.lane.b32.xlu1 %v3282_v63, %s3521_s5 }
 0x63c   :  { %v3284_v0 = vpop.eup %3283 }
 0x63d   :  { %795 = vrot.lane.b32.xlu0 %v3284_v0, %s3521_s5  ;;  %v3286_v5 = vpop.eup %3285 }
 0x63e   :  { %v892_v6 = vadd.f32 1.0, %v3286_v5  ;;  %v3288_v7 = vpop.eup %3287 }
 0x63f   :  { %v786_v8 = vadd.f32 1.0, %v3288_v7 }
 0x640   :  { %3289 = vrcp.f32 %v892_v6 }
 0x641   :  { %3291 = vrcp.f32 %v786_v8 }
 0x64a   :  { %v3290_v10 = vpop.eup %3289 }
 0x64b   :  { %v3292_v13 = vpop.eup %3291  ;;  %v899_v20 = vmul.f32 %v3290_v10, %v897_v19 }
 0x64c   :  { %v793_v24 = vmul.f32 %v3292_v13, %v791_v22 }
 0x6ab   :  { %v902_v11 = vpop.permute.xlu1 %901 }
 0x6ac   :  { %v904_v12 = vmul.f32 %v3290_v10, %v902_v11 }
 0x6ae   :  { %906 = vrot.lane.b32.xlu1 %v904_v12, %s3522_s18 }
 0x6af   :  { %v796_v15 = vpop.permute.xlu0 %795 }
 0x6b0   :  { %v798_v17 = vmul.f32 %v3292_v13, %v796_v15 }
 0x6b2   :  { %800 = vrot.lane.b32.xlu0 %v798_v17, %s3522_s18 }
 0x720   :  { %v907_v21 = vpop.permute.xlu1 %906 }
 0x721   :  { %v3850_v23 = vadd.f32 %v907_v21, %v899_v20 }
 0x723   :  { %3293 = vtanh.f32 %v3850_v23  ;;  %v1121_v0 = vrot.slane %v3850_v23, 2 }
 0x724   :  { %v801_v25 = vpop.permute.xlu0 %800 }
 0x725   :  { %v3853_v26 = vadd.f32 %v801_v25, %v793_v24 }
 0x727   :  { %3295 = vtanh.f32 %v3853_v26  ;;  %v1015_v5 = vrot.slane %v3853_v26, 6 }
 0x72d   :  { %v3294_v27 = vpop.eup %3293 }
 0x72e   :  { %912 = vrot.lane.b32.xlu1 %v3294_v27, %s3521_s5 }
 0x731   :  { %v3296_v29 = vpop.eup %3295 }
 0x732   :  { %806 = vrot.lane.b32.xlu0 %v3296_v29, %s3521_s5 }
 0x7a0   :  { %v913_v30 = vpop.permute.xlu1 %912 }
 0x7a1   :  { %v3858_v31 = vmul.f32 %v3290_v10, %v913_v30 }
 0x7a3   :  { %v1034_v32 = vrot.slane %v3858_v31, 4 }
 0x7a4   :  { %v807_v33 = vpop.permute.xlu0 %806 }
 0x7a5   :  { %v3861_v34 = vmul.f32 %v3292_v13, %v807_v33  ;;  %1035 = vrot.lane.b32.xlu1 %v1034_v32, %s3522_s18 }
 0x7a7   :  { %v928_v35 = vrot.slane %v3861_v34, 2 }
 0x7a9   :  { %929 = vrot.lane.b32.xlu0 %v928_v35, %s3522_s18 }
 0x817   :  { %v1036_v36 = vpop.permute.xlu1 %1035 }
 0x818   :  { %2890 = vmatmul.mubr.msk.f32.vlgmr.msra.gmra.mrb[8].mxu0 %vm229_vm4, %v1036_v36 }
 0x819   :  { %3151 = vmatpush3.bf16.msra.mxu0 %v3740_v49  ;;  %2911 = vmatprep.mubr.msk.f32.mxu0 %vm3520_vm5, %v3518_v28 }
 0x81a   :  { %3152 = vmatprep.subr.bf16.mxu0 %v3519_v48 }
 0x81b   :  { %v930_v37 = vpop.permute.xlu0 %929 }
 0x81c   :  { %2879 = vmatmul.mubr.msk.f32.vlgmr.msra.gmra.mrb[8].mxu1 %vm229_vm4, %v930_v37 }
 0x81d   :  { %3145 = vmatpush3.bf16.msra.mxu1 %v3775_v1  ;;  %3154 = vmatpush3.bf16.msra.mxu0 %v3744_v52 }
 0x81e   :  { %3146 = vmatprep.subr.bf16.mxu1 %v3519_v48  ;;  %2900 = vmatprep.mubr.msk.f32.mxu1 %vm3520_vm5, %v3518_v28 }
 0x81f   :  { %3161 = vmatprep.subr.bf16.mxu0 %v3519_v48 }
 0x821   :  { %3148 = vmatpush3.bf16.msra.mxu1 %v3786_v4 }
 0x822   :  { %3155 = vmatprep.subr.bf16.mxu1 %v3519_v48 }
 0x8eb   :  { %v1105_v38 = vpop.f32.mrb[8].mxu0 }
 0x8ec   :  { %v1110_v39 = vrot.slane %v1105_v38, 6  ;;  %v2891_v40 = vpop.f32.mrb[9].mxu0 }
 0x8ee   :  { %v1112_v41 = vadd.f32 %v1110_v39, %v3802_v14 }
 0x8ef   :  { %v999_v42 = vpop.f32.mrb[8].mxu1 }
 0x8f0   :  { %3297 = vtanh.f32 %v1112_v41  ;;  %v1004_v43 = vrot.slane %v999_v42, 4  ;;  %v2880_v44 = vpop.f32.mrb[9].mxu1  ;;  %v2591_v51 = vmul.f32 -1.442695, %v1112_v41 }
 0x8f2   :  { %v1006_v45 = vadd.f32 %v1004_v43, %v3807_v18 }
 0x8f4   :  { %3299 = vtanh.f32 %v1006_v45  ;;  %v2589_v53 = vmul.f32 -1.442695, %v1006_v45 }
 0x8f5   :  { %3301 = vpow2.f32 %v2591_v51 }
 0x8f6   :  { %3303 = vpow2.f32 %v2589_v53 }
 0x8fa   :  { %v3298_v47 = vpop.eup %3297 }
 0x8fb   :  { %1125 = vrot.lane.b32.xlu1 %v3298_v47, %s3521_s5 }
 0x8fe   :  { %v3300_v50 = vpop.eup %3299 }
 0x8ff   :  { %1019 = vrot.lane.b32.xlu0 %v3300_v50, %s3521_s5  ;;  %v3302_v54 = vpop.eup %3301 }
 0x900   :  { %v1116_v55 = vadd.f32 1.0, %v3302_v54  ;;  %v3304_v56 = vpop.eup %3303 }
 0x901   :  { %v1010_v57 = vadd.f32 1.0, %v3304_v56 }
 0x902   :  { %3305 = vrcp.f32 %v1116_v55 }
 0x903   :  { %3307 = vrcp.f32 %v1010_v57 }
 0x90c   :  { %v3306_v58 = vpop.eup %3305 }
 0x90d   :  { %v3308_v61 = vpop.eup %3307  ;;  %v1123_v2 = vmul.f32 %v3306_v58, %v1121_v0 }
 0x90e   :  { %v1017_v7 = vmul.f32 %v3308_v61, %v1015_v5 }
 0x96d   :  { %v1126_v59 = vpop.permute.xlu1 %1125 }
 0x96e   :  { %v1128_v60 = vmul.f32 %v3306_v58, %v1126_v59 }
 0x970   :  { %1130 = vrot.lane.b32.xlu1 %v1128_v60, %s3522_s18 }
 0x971   :  { %v1020_v62 = vpop.permute.xlu0 %1019 }
 0x972   :  { %v1022_v63 = vmul.f32 %v3308_v61, %v1020_v62 }
 0x974   :  { %1024 = vrot.lane.b32.xlu0 %v1022_v63, %s3522_s18 }
 0x9e2   :  { %v1131_v3 = vpop.permute.xlu1 %1130 }
 0x9e3   :  { %v3888_v6 = vadd.f32 %v1131_v3, %v1123_v2 }
 0x9e5   :  { %3309 = vtanh.f32 %v3888_v6  ;;  %v1342_v47 = vrot.slane %v3888_v6, 2 }
 0x9e6   :  { %v1025_v8 = vpop.permute.xlu0 %1024 }
 0x9e7   :  { %v3891_v10 = vadd.f32 %v1025_v8, %v1017_v7 }
 0x9e9   :  { %3311 = vtanh.f32 %v3891_v10  ;;  %v1239_v54 = vrot.slane %v3891_v10, 6 }
 0x9ef   :  { %v3310_v11 = vpop.eup %3309 }
 0x9f0   :  { %1136 = vrot.lane.b32.xlu1 %v3310_v11, %s3521_s5 }
 0x9f3   :  { %v3312_v12 = vpop.eup %3311 }
 0x9f4   :  { %1030 = vrot.lane.b32.xlu0 %v3312_v12, %s3521_s5 }
 0xa62   :  { %v1137_v13 = vpop.permute.xlu1 %1136 }
 0xa63   :  { %v3896_v15 = vmul.f32 %v3306_v58, %v1137_v13 }
 0xa65   :  { %v1258_v17 = vrot.slane %v3896_v15, 2 }
 0xa66   :  { %v1031_v19 = vpop.permute.xlu0 %1030 }
 0xa67   :  { %v3899_v20 = vmul.f32 %v3308_v61, %v1031_v19  ;;  %1259 = vrot.lane.b32.xlu1 %v1258_v17, %s3522_s18 }
 0xa69   :  { %v1152_v21 = vrot.slane %v3899_v20, 4 }
 0xa6b   :  { %1153 = vrot.lane.b32.xlu0 %v1152_v21, %s3522_s18 }
 0xad9   :  { %v1260_v22 = vpop.permute.xlu1 %1259 }
 0xada   :  { %2912 = vmatmul.mubr.msk.f32.vlgmr.msra.gmra.mrb[10].mxu0 %vm229_vm4, %v1260_v22 }
 0xadb   :  { %3163 = vmatpush3.bf16.msra.mxu0 %v3740_v49  ;;  %2933 = vmatprep.mubr.msk.f32.mxu0 %vm3520_vm5, %v3518_v28 }
 0xadc   :  { %3164 = vmatprep.subr.bf16.mxu0 %v3519_v48 }
 0xadd   :  { %v1154_v23 = vpop.permute.xlu0 %1153 }
 0xade   :  { %2901 = vmatmul.mubr.msk.f32.vlgmr.msra.gmra.mrb[10].mxu1 %vm229_vm4, %v1154_v23 }
 0xadf   :  { %3166 = vmatpush3.bf16.msra.mxu0 %v3744_v52  ;;  %3157 = vmatpush3.bf16.msra.mxu1 %v3775_v1 }
 0xae0   :  { %3158 = vmatprep.subr.bf16.mxu1 %v3519_v48  ;;  %2922 = vmatprep.mubr.msk.f32.mxu1 %vm3520_vm5, %v3518_v28 }
 0xae1   :  { %3173 = vmatprep.subr.bf16.mxu0 %v3519_v48 }
 0xae3   :  { %3160 = vmatpush3.bf16.msra.mxu1 %v3786_v4 }
 0xae4   :  { %3167 = vmatprep.subr.bf16.mxu1 %v3519_v48 }
 0xbad   :  { %v1329_v24 = vpop.f32.mrb[10].mxu0 }
 0xbae   :  { %v1333_v25 = vadd.f32 %v1329_v24, %v3802_v14  ;;  %v2913_v26 = vpop.f32.mrb[11].mxu0 }
 0xbb0   :  { %3313 = vtanh.f32 %v1333_v25  ;;  %v2595_v36 = vmul.f32 -1.442695, %v1333_v25 }
 0xbb1   :  { %v1223_v27 = vpop.f32.mrb[10].mxu1 }
 0xbb2   :  { %v1228_v29 = vrot.slane %v1223_v27, 2  ;;  %v2902_v30 = vpop.f32.mrb[11].mxu1 }
 0xbb4   :  { %v1230_v32 = vadd.f32 %v1228_v29, %v3807_v18 }
 0xbb6   :  { %3315 = vtanh.f32 %v1230_v32  ;;  %v2593_v37 = vmul.f32 -1.442695, %v1230_v32 }
 0xbb7   :  { %3317 = vpow2.f32 %v2595_v36 }
 0xbb8   :  { %3319 = vpow2.f32 %v2593_v37 }
 0xbba   :  { %v3314_v33 = vpop.eup %3313 }
 0xbbb   :  { %1346 = vrot.lane.b32.xlu0 %v3314_v33, %s3521_s5 }
 0xbc0   :  { %v3316_v35 = vpop.eup %3315 }
 0xbc1   :  { %1243 = vrot.lane.b32.xlu1 %v3316_v35, %s3521_s5  ;;  %v3318_v38 = vpop.eup %3317 }
 0xbc2   :  { %v1337_v14 = vadd.f32 1.0, %v3318_v38  ;;  %v3320_v39 = vpop.eup %3319 }
 0xbc3   :  { %v1234_v40 = vadd.f32 1.0, %v3320_v39 }
 0xbc4   :  { %3321 = vrcp.f32 %v1337_v14 }
 0xbc5   :  { %3323 = vrcp.f32 %v1234_v40 }
 0xbce   :  { %v3322_v41 = vpop.eup %3321 }
 0xbcf   :  { %v3324_v43 = vpop.eup %3323  ;;  %v1344_v50 = vmul.f32 %v3322_v41, %v1342_v47 }
 0xbd0   :  { %v1241_v55 = vmul.f32 %v3324_v43, %v1239_v54 }
 0xc2d   :  { %v1347_v42 = vpop.permute.xlu0 %1346 }
 0xc2e   :  { %v1349_v18 = vmul.f32 %v3322_v41, %v1347_v42 }
 0xc30   :  { %1351 = vrot.lane.b32.xlu0 %v1349_v18, %s3522_s18 }
 0xc33   :  { %v1244_v44 = vpop.permute.xlu1 %1243 }
 0xc34   :  { %v1246_v45 = vmul.f32 %v3324_v43, %v1244_v44 }
 0xc36   :  { %1248 = vrot.lane.b32.xlu1 %v1246_v45, %s3522_s18 }
 0xca2   :  { %v1352_v51 = vpop.permute.xlu0 %1351 }
 0xca3   :  { %v3925_v53 = vadd.f32 %v1352_v51, %v1344_v50 }
 0xca5   :  { %3325 = vtanh.f32 %v3925_v53  ;;  %v1562_v35 = vrot.slane %v3925_v53, 2 }
 0xca8   :  { %v1249_v56 = vpop.permute.xlu1 %1248 }
 0xca9   :  { %v3929_v57 = vadd.f32 %v1249_v56, %v1241_v55 }
 0xcab   :  { %3327 = vtanh.f32 %v3929_v57  ;;  %v1457_v14 = vrot.slane %v3929_v57, 6 }
 0xcaf   :  { %v3326_v58 = vpop.eup %3325 }
 0xcb0   :  { %1357 = vrot.lane.b32.xlu0 %v3326_v58, %s3521_s5 }
 0xcb5   :  { %v3328_v59 = vpop.eup %3327 }
 0xcb6   :  { %1254 = vrot.lane.b32.xlu1 %v3328_v59, %s3521_s5 }
 0xd22   :  { %v1358_v60 = vpop.permute.xlu0 %1357 }
 0xd23   :  { %v3934_v61 = vmul.f32 %v3322_v41, %v1358_v60 }
 0xd25   :  { %1476 = vrot.lane.b32.xlu0 %v3934_v61, %s3522_s18 }
 0xd28   :  { %v1255_v62 = vpop.permute.xlu1 %1254 }
 0xd29   :  { %v3938_v63 = vmul.f32 %v3324_v43, %v1255_v62 }
 0xd2b   :  { %v1373_v0 = vrot.slane %v3938_v63, 6 }
 0xd2d   :  { %1374 = vrot.lane.b32.xlu1 %v1373_v0, %s3522_s18 }
 0xd97   :  { %v1477_v2 = vpop.permute.xlu0 %1476 }
 0xd98   :  { %2934 = vmatmul.mubr.msk.f32.vlgmr.msra.gmra.mrb[12].mxu0 %vm229_vm4, %v1477_v2 }
 0xd99   :  { %3175 = vmatpush3.bf16.msra.mxu0 %v3740_v49  ;;  %2955 = vmatprep.mubr.msk.f32.mxu0 %vm3520_vm5, %v3518_v28 }
 0xd9a   :  { %3176 = vmatprep.subr.bf16.mxu0 %v3519_v48 }
 0xd9d   :  { %3178 = vmatpush3.bf16.msra.mxu0 %v3744_v52 }
 0xd9e   :  { %3185 = vmatprep.subr.bf16.mxu0 %v3519_v48 }
 0xd9f   :  { %v1375_v3 = vpop.permute.xlu1 %1374 }
 0xda0   :  { %2923 = vmatmul.mubr.msk.f32.vlgmr.msra.gmra.mrb[12].mxu1 %vm229_vm4, %v1375_v3 }
 0xda1   :  { %3169 = vmatpush3.bf16.msra.mxu1 %v3775_v1  ;;  %2944 = vmatprep.mubr.msk.f32.mxu1 %vm3520_vm5, %v3518_v28 }
 0xda2   :  { %3170 = vmatprep.subr.bf16.mxu1 %v3519_v48 }
 0xda5   :  { %3172 = vmatpush3.bf16.msra.mxu1 %v3786_v4 }
 0xda6   :  { %3179 = vmatprep.subr.bf16.mxu1 %v3519_v48 }
 0xe6b   :  { %v1546_v5 = vpop.f32.mrb[12].mxu0 }
 0xe6c   :  { %v1551_v6 = vrot.slane %v1546_v5, 2  ;;  %v2935_v7 = vpop.f32.mrb[13].mxu0 }
 0xe6e   :  { %v1553_v8 = vadd.f32 %v1551_v6, %v3804_v16 }
 0xe70   :  { %3329 = vtanh.f32 %v1553_v8  ;;  %v2599_v19 = vmul.f32 -1.442695, %v1553_v8 }
 0xe73   :  { %v1444_v10 = vpop.f32.mrb[12].mxu1 }
 0xe74   :  { %v1448_v11 = vadd.f32 %v1444_v10, %v3800_v9  ;;  %v2924_v12 = vpop.f32.mrb[13].mxu1 }
 0xe76   :  { %3331 = vtanh.f32 %v1448_v11  ;;  %v2597_v21 = vmul.f32 -1.442695, %v1448_v11 }
 0xe77   :  { %3333 = vpow2.f32 %v2599_v19 }
 0xe78   :  { %3335 = vpow2.f32 %v2597_v21 }
 0xe7a   :  { %v3330_v13 = vpop.eup %3329 }
 0xe7b   :  { %1566 = vrot.lane.b32.xlu0 %v3330_v13, %s3521_s5 }
 0xe80   :  { %v3332_v17 = vpop.eup %3331 }
 0xe81   :  { %1461 = vrot.lane.b32.xlu1 %v3332_v17, %s3521_s5  ;;  %v3334_v22 = vpop.eup %3333 }
 0xe82   :  { %v1557_v23 = vadd.f32 1.0, %v3334_v22  ;;  %v3336_v24 = vpop.eup %3335 }
 0xe83   :  { %v1452_v25 = vadd.f32 1.0, %v3336_v24 }
 0xe84   :  { %3337 = vrcp.f32 %v1557_v23 }
 0xe85   :  { %3339 = vrcp.f32 %v1452_v25 }
 0xe8e   :  { %v3338_v26 = vpop.eup %3337 }
 0xe8f   :  { %v3340_v30 = vpop.eup %3339  ;;  %v1564_v36 = vmul.f32 %v3338_v26, %v1562_v35 }
 0xe90   :  { %v1459_v39 = vmul.f32 %v3340_v30, %v1457_v14 }
 0xeed   :  { %v1567_v27 = vpop.permute.xlu0 %1566 }
 0xeee   :  { %v1569_v29 = vmul.f32 %v3338_v26, %v1567_v27 }
 0xef0   :  { %1571 = vrot.lane.b32.xlu0 %v1569_v29, %s3522_s18 }
 0xef3   :  { %v1462_v32 = vpop.permute.xlu1 %1461 }
 0xef4   :  { %v1464_v33 = vmul.f32 %v3340_v30, %v1462_v32 }
 0xef6   :  { %1466 = vrot.lane.b32.xlu1 %v1464_v33, %s3522_s18 }
 0xf62   :  { %v1572_v37 = vpop.permute.xlu0 %1571 }
 0xf63   :  { %v3963_v38 = vadd.f32 %v1572_v37, %v1564_v36 }
 0xf65   :  { %3341 = vtanh.f32 %v3963_v38  ;;  %v1781_v22 = vrot.slane %v3963_v38, 2 }
 0xf68   :  { %v1467_v40 = vpop.permute.xlu1 %1466 }
 0xf69   :  { %v3967_v41 = vadd.f32 %v1467_v40, %v1459_v39 }
 0xf6b   :  { %3343 = vtanh.f32 %v3967_v41  ;;  %v1675_v25 = vrot.slane %v3967_v41, 6 }
 0xf6f   :  { %v3342_v42 = vpop.eup %3341 }
 0xf70   :  { %1577 = vrot.lane.b32.xlu0 %v3342_v42, %s3521_s5 }
 0xf75   :  { %v3344_v18 = vpop.eup %3343 }
 0xf76   :  { %1472 = vrot.lane.b32.xlu1 %v3344_v18, %s3521_s5 }
 0xfe2   :  { %v1578_v43 = vpop.permute.xlu0 %1577 }
 0xfe3   :  { %v3972_v44 = vmul.f32 %v3338_v26, %v1578_v43 }
 0xfe5   :  { %v1694_v45 = vrot.slane %v3972_v44, 6 }
 0xfe7   :  { %1695 = vrot.lane.b32.xlu1 %v1694_v45, %s3522_s18 }
 0xfe8   :  { %v1473_v47 = vpop.permute.xlu1 %1472 }
 0xfe9   :  { %v1475_v50 = vmul.f32 %v3340_v30, %v1473_v47 }
 0xfeb   :  { %1582 = vrot.lane.b32.xlu0 %v1475_v50, %s3522_s18 }
0x1059   :  { %v1696_v51 = vpop.permute.xlu1 %1695 }
0x105a   :  { %2956 = vmatmul.mubr.msk.f32.vlgmr.msra.gmra.mrb[14].mxu0 %vm229_vm4, %v1696_v51 }
0x105b   :  { %3187 = vmatpush3.bf16.msra.mxu0 %v3740_v49  ;;  %2977 = vmatprep.mubr.msk.f32.mxu0 %vm3520_vm5, %v3518_v28 }
0x105c   :  { %3188 = vmatprep.subr.bf16.mxu0 %v3519_v48 }
0x105d   :  { %v3982_v53 = vpop.permute.xlu0 %1582 }
0x105e   :  { %2945 = vmatmul.mubr.msk.f32.vlgmr.msra.gmra.mrb[14].mxu1 %vm229_vm4, %v3982_v53 }
0x105f   :  { %3181 = vmatpush3.bf16.msra.mxu1 %v3775_v1  ;;  %3190 = vmatpush3.bf16.msra.mxu0 %v3744_v52 }
0x1060   :  { %3182 = vmatprep.subr.bf16.mxu1 %v3519_v48  ;;  %2966 = vmatprep.mubr.msk.f32.mxu1 %vm3520_vm5, %v3518_v28 }
0x1061   :  { %3197 = vmatprep.subr.bf16.mxu0 %v3519_v48 }
0x1063   :  { %3184 = vmatpush3.bf16.msra.mxu1 %v3786_v4 }
0x1064   :  { %3191 = vmatprep.subr.bf16.mxu1 %v3519_v48 }
0x112d   :  { %v1765_v54 = vpop.f32.mrb[14].mxu0 }
0x112e   :  { %v1770_v55 = vrot.slane %v1765_v54, 4  ;;  %v2957_v56 = vpop.f32.mrb[15].mxu0 }
0x1130   :  { %v1772_v57 = vadd.f32 %v1770_v55, %v3804_v16 }
0x1131   :  { %v1659_v58 = vpop.f32.mrb[14].mxu1 }
0x1132   :  { %3345 = vtanh.f32 %v1772_v57  ;;  %v1664_v59 = vrot.slane %v1659_v58, 6  ;;  %v2946_v60 = vpop.f32.mrb[15].mxu1  ;;  %v2603_v3 = vmul.f32 -1.442695, %v1772_v57 }
0x1134   :  { %v1666_v62 = vadd.f32 %v1664_v59, %v3800_v9 }
0x1136   :  { %3347 = vtanh.f32 %v1666_v62  ;;  %v2601_v5 = vmul.f32 -1.442695, %v1666_v62 }
0x1137   :  { %3349 = vpow2.f32 %v2603_v3 }
0x1138   :  { %3351 = vpow2.f32 %v2601_v5 }
0x113c   :  { %v3346_v0 = vpop.eup %3345 }
0x113d   :  { %1785 = vrot.lane.b32.xlu1 %v3346_v0, %s3521_s5 }
0x1140   :  { %v3348_v2 = vpop.eup %3347 }
0x1141   :  { %1679 = vrot.lane.b32.xlu0 %v3348_v2, %s3521_s5  ;;  %v3350_v6 = vpop.eup %3349 }
0x1142   :  { %v1776_v7 = vadd.f32 1.0, %v3350_v6  ;;  %v3352_v8 = vpop.eup %3351 }
0x1143   :  { %v1670_v10 = vadd.f32 1.0, %v3352_v8 }
0x1144   :  { %3353 = vrcp.f32 %v1776_v7 }
0x1145   :  { %3355 = vrcp.f32 %v1670_v10 }
0x114e   :  { %v3354_v11 = vpop.eup %3353 }
0x114f   :  { %v3356_v17 = vpop.eup %3355  ;;  %v1783_v23 = vmul.f32 %v3354_v11, %v1781_v22 }
0x1150   :  { %v1677_v27 = vmul.f32 %v3356_v17, %v1675_v25 }
0x11af   :  { %v1786_v12 = vpop.permute.xlu1 %1785 }
0x11b0   :  { %v1788_v13 = vmul.f32 %v3354_v11, %v1786_v12 }
0x11b2   :  { %1790 = vrot.lane.b32.xlu1 %v1788_v13, %s3522_s18 }
0x11b3   :  { %v1680_v19 = vpop.permute.xlu0 %1679 }
0x11b4   :  { %v1682_v21 = vmul.f32 %v3356_v17, %v1680_v19 }
0x11b6   :  { %1684 = vrot.lane.b32.xlu0 %v1682_v21, %s3522_s18 }
0x1224   :  { %v1791_v24 = vpop.permute.xlu1 %1790 }
0x1225   :  { %v4002_v26 = vadd.f32 %v1791_v24, %v1783_v23 }
0x1227   :  { %3357 = vtanh.f32 %v4002_v26  ;;  %v2003_v2 = vrot.slane %v4002_v26, 2 }
0x1228   :  { %v1685_v29 = vpop.permute.xlu0 %1684 }
0x1229   :  { %v4005_v30 = vadd.f32 %v1685_v29, %v1677_v27 }
0x122b   :  { %3359 = vtanh.f32 %v4005_v30  ;;  %v1897_v6 = vrot.slane %v4005_v30, 6 }
0x1231   :  { %v3358_v32 = vpop.eup %3357 }
0x1232   :  { %1796 = vrot.lane.b32.xlu1 %v3358_v32, %s3521_s5 }
0x1235   :  { %v3360_v33 = vpop.eup %3359 }
0x1236   :  { %1690 = vrot.lane.b32.xlu0 %v3360_v33, %s3521_s5 }
0x12a4   :  { %v1797_v35 = vpop.permute.xlu1 %1796 }
0x12a5   :  { %v4010_v36 = vmul.f32 %v3354_v11, %v1797_v35 }
0x12a7   :  { %v1916_v37 = vrot.slane %v4010_v36, 4 }
0x12a8   :  { %v1691_v38 = vpop.permute.xlu0 %1690 }
0x12a9   :  { %v4013_v14 = vmul.f32 %v3356_v17, %v1691_v38  ;;  %1917 = vrot.lane.b32.xlu1 %v1916_v37, %s3522_s18 }
0x12ab   :  { %v1810_v39 = vrot.slane %v4013_v14, 2 }
0x12ad   :  { %1811 = vrot.lane.b32.xlu0 %v1810_v39, %s3522_s18 }
0x131b   :  { %v1918_v40 = vpop.permute.xlu1 %1917 }
0x131c   :  { %2978 = vmatmul.mubr.msk.f32.vlgmr.msra.gmra.mrb[16].mxu0 %vm229_vm4, %v1918_v40 }
0x131d   :  { %3199 = vmatpush3.bf16.msra.mxu0 %v3740_v49  ;;  %2999 = vmatprep.mubr.msk.f32.mxu0 %vm3520_vm5, %v3518_v28 }
0x131e   :  { %3200 = vmatprep.subr.bf16.mxu0 %v3519_v48 }
0x131f   :  { %v1812_v41 = vpop.permute.xlu0 %1811 }
0x1320   :  { %2967 = vmatmul.mubr.msk.f32.vlgmr.msra.gmra.mrb[16].mxu1 %vm229_vm4, %v1812_v41 }
0x1321   :  { %3193 = vmatpush3.bf16.msra.mxu1 %v3775_v1  ;;  %3202 = vmatpush3.bf16.msra.mxu0 %v3744_v52 }
0x1322   :  { %3194 = vmatprep.subr.bf16.mxu1 %v3519_v48  ;;  %2988 = vmatprep.mubr.msk.f32.mxu1 %vm3520_vm5, %v3518_v28 }
0x1325   :  { %3196 = vmatpush3.bf16.msra.mxu1 %v3786_v4 }
0x13ef   :  { %v1987_v49 = vpop.f32.mrb[16].mxu0 }
0x13f0   :  { %v1992_v42 = vrot.slane %v1987_v49, 6  ;;  %v2979_v18 = vpop.f32.mrb[17].mxu0 }
0x13f2   :  { %v1994_v43 = vadd.f32 %v1992_v42, %v3804_v16 }
0x13f3   :  { %v1881_v45 = vpop.f32.mrb[16].mxu1 }
0x13f4   :  { %3361 = vtanh.f32 %v1994_v43  ;;  %v1886_v47 = vrot.slane %v1881_v45, 4  ;;  %v2968_v50 = vpop.f32.mrb[17].mxu1  ;;  %v2607_v28 = vmul.f32 -1.442695, %v1994_v43 }
0x13f6   :  { %v1888_v1 = vadd.f32 %v1886_v47, %v3800_v9 }
0x13f8   :  { %3363 = vtanh.f32 %v1888_v1  ;;  %v2605_v4 = vmul.f32 -1.442695, %v1888_v1 }
0x13f9   :  { %3365 = vpow2.f32 %v2607_v28 }
0x13fa   :  { %3367 = vpow2.f32 %v2605_v4 }
0x13fe   :  { %v3362_v52 = vpop.eup %3361 }
0x13ff   :  { %2007 = vrot.lane.b32.xlu1 %v3362_v52, %s3521_s5 }
0x1402   :  { %v3364_v48 = vpop.eup %3363 }
0x1403   :  { %1901 = vrot.lane.b32.xlu0 %v3364_v48, %s3521_s5  ;;  %v3366_v51 = vpop.eup %3365 }
0x1404   :  { %v1998_v54 = vadd.f32 1.0, %v3366_v51  ;;  %v3368_v55 = vpop.eup %3367 }
0x1405   :  { %v1892_v56 = vadd.f32 1.0, %v3368_v55 }
0x1406   :  { %3369 = vrcp.f32 %v1998_v54 }
0x1407   :  { %3371 = vrcp.f32 %v1892_v56 }
0x1410   :  { %v3370_v57 = vpop.eup %3369 }
0x1411   :  { %v3372_v60 = vpop.eup %3371  ;;  %v2005_v3 = vmul.f32 %v3370_v57, %v2003_v2 }
0x1412   :  { %v1899_v8 = vmul.f32 %v3372_v60, %v1897_v6  ;;  %v2354_v6 = vld [vmem:[%s4214_s12 + $0x10] sm:$0xff] }
0x1471   :  { %v2008_v58 = vpop.permute.xlu1 %2007 }
0x1472   :  { %v2010_v59 = vmul.f32 %v3370_v57, %v2008_v58 }
0x1474   :  { %2012 = vrot.lane.b32.xlu1 %v2010_v59, %s3522_s18  ;;  %v2260_v59 = vld [vmem:[%s4212_s10 + $0x38] sm:$0xff] }
0x1475   :  { %v1902_v62 = vpop.permute.xlu0 %1901 }
0x1476   :  { %v1904_v0 = vmul.f32 %v3372_v60, %v1902_v62 }
0x1478   :  { %1906 = vrot.lane.b32.xlu0 %v1904_v0, %s3522_s18 }
0x14e6   :  { %v2013_v5 = vpop.permute.xlu1 %2012 }
0x14e7   :  { %v2015_v7 = vadd.f32 %v2013_v5, %v2005_v3  ;;  %v2352_v3 = vld [vmem:[%s4214_s12] sm:$0xff]  ;;  %v2353_v5 = vld [vmem:[%s4214_s12 + $0x8] sm:$0xff] }
0x14e9   :  { %3373 = vtanh.f32 %v2015_v7  ;;  %v2222_v52 = vrot.slane %v2015_v7, 2  ;;  %v3219_v7 = vpack.c.bf16 %v2353_v5, %v2352_v3 }
0x14ea   :  { %v1907_v10 = vpop.permute.xlu0 %1906 }
0x14eb   :  { %v1909_v11 = vadd.f32 %v1907_v10, %v1899_v8  ;;  %v2355_v8 = vld [vmem:[%s4214_s12 + $0x18] sm:$0xff]  ;;  %3220 = vmatprep.subr.bf16.mxu0 %v3219_v7 }
0x14ed   :  { %3375 = vtanh.f32 %v1909_v11  ;;  %v2119_v51 = vrot.slane %v1909_v11, 6  ;;  %v3223_v11 = vpack.c.bf16 %v2355_v8, %v2354_v6 }
0x14f3   :  { %v3374_v12 = vpop.eup %3373 }
0x14f4   :  { %2018 = vrot.lane.b32.xlu1 %v3374_v12, %s3521_s5  ;;  %v2356_v12 = vld [vmem:[%s4214_s12 + $0x20] sm:$0xff] }
0x14f7   :  { %v3376_v13 = vpop.eup %3375 }
0x14f8   :  { %1912 = vrot.lane.b32.xlu0 %v3376_v13, %s3521_s5  ;;  %v2357_v13 = vld [vmem:[%s4214_s12 + $0x28] sm:$0xff] }
0x1566   :  { %v2019_v17 = vpop.permute.xlu1 %2018 }
0x1567   :  { %v4040_v19 = vmul.f32 %v3370_v57, %v2019_v17 }
0x1569   :  { %v2138_v21 = vrot.slane %v4040_v19, 2 }
0x156a   :  { %v1913_v22 = vpop.permute.xlu0 %1912 }
0x156b   :  { %v4043_v23 = vmul.f32 %v3372_v60, %v1913_v22  ;;  %2139 = vrot.lane.b32.xlu1 %v2138_v21, %s3522_s18  ;;  %v3227_v21 = vpack.c.bf16 %v2357_v13, %v2356_v12 }
0x156d   :  { %v2032_v24 = vrot.slane %v4043_v23, 4 }
0x156f   :  { %2033 = vrot.lane.b32.xlu0 %v2032_v24, %s3522_s18 }
0x15dd   :  { %v2140_v25 = vpop.permute.xlu1 %2139 }
0x15de   :  { %3000 = vmatmul.mubr.msk.f32.vlgmr.msra.gmra.mrb[18].mxu0 %vm229_vm4, %v2140_v25 }
0x15df   :  { %3222 = vmatpush3.bf16.msra.mxu0 %v3219_v7 }
0x15e0   :  { %3224 = vmatprep.subr.bf16.mxu0 %v3223_v11 }
0x15e1   :  { %v2034_v26 = vpop.permute.xlu0 %2033 }
0x15e2   :  { %2989 = vmatmul.mubr.msk.f32.vlgmr.msra.gmra.mrb[18].mxu1 %vm229_vm4, %v2034_v26 }
0x15e3   :  { %3226 = vmatpush3.bf16.msra.mxu0 %v3223_v11 }
0x15e4   :  { %3228 = vmatprep.subr.bf16.mxu0 %v3227_v21 }
0x15e7   :  { %3230 = vmatpush3.bf16.msra.mxu0 %v3227_v21 }
0x16b1   :  { %v2209_v27 = vpop.f32.mrb[18].mxu0 }
0x16b2   :  { %v2213_v29 = vadd.f32 %v2209_v27, %v3804_v16  ;;  %v3001_v30 = vpop.f32.mrb[19].mxu0 }
0x16b4   :  { %3377 = vtanh.f32 %v2213_v29  ;;  %v2611_v40 = vmul.f32 -1.442695, %v2213_v29 }
0x16b5   :  { %v2103_v32 = vpop.f32.mrb[18].mxu1 }
0x16b6   :  { %v2108_v33 = vrot.slane %v2103_v32, 2  ;;  %v2990_v35 = vpop.f32.mrb[19].mxu1 }
0x16b8   :  { %v2110_v37 = vadd.f32 %v2108_v33, %v3800_v9 }
0x16ba   :  { %3379 = vtanh.f32 %v2110_v37  ;;  %v2609_v41 = vmul.f32 -1.442695, %v2110_v37 }
0x16bb   :  { %3381 = vpow2.f32 %v2611_v40  ;;  %v2359_v40 = vld [vmem:[%s4214_s12 + $0x38] sm:$0xff] }
0x16bc   :  { %3383 = vpow2.f32 %v2609_v41 }
0x16be   :  { %v3378_v38 = vpop.eup %3377 }
0x16bf   :  { %2226 = vrot.lane.b32.xlu0 %v3378_v38, %s3521_s5 }
0x16c4   :  { %v3380_v39 = vpop.eup %3379 }
0x16c5   :  { %2123 = vrot.lane.b32.xlu1 %v3380_v39, %s3521_s5  ;;  %v3382_v49 = vpop.eup %3381  ;;  %v2358_v39 = vld [vmem:[%s4214_s12 + $0x30] sm:$0xff] }
0x16c6   :  { %v2217_v16 = vadd.f32 1.0, %v3382_v49  ;;  %v3384_v42 = vpop.eup %3383  ;;  %v3231_v41 = vpack.c.bf16 %v2359_v40, %v2358_v39  ;;  %v2450_v49 = vld [vmem:[%s4216_s14] sm:$0xff] }
0x16c7   :  { %v2114_v18 = vadd.f32 1.0, %v3384_v42  ;;  %v2452_v42 = vld [vmem:[%s4216_s14 + $0x10] sm:$0xff] }
0x16c8   :  { %3385 = vrcp.f32 %v2217_v16  ;;  %3232 = vmatprep.subr.bf16.mxu0 %v3231_v41  ;;  %v2451_v16 = vld [vmem:[%s4216_s14 + $0x8] sm:$0xff] }
0x16c9   :  { %3387 = vrcp.f32 %v2114_v18  ;;  %3234 = vmatpush3.bf16.msra.mxu0 %v3231_v41  ;;  %v3235_v18 = vpack.c.bf16 %v2451_v16, %v2450_v49 }
0x16d2   :  { %v3386_v43 = vpop.eup %3385 }
0x16d3   :  { %v4055_v47 = vpop.eup %3387  ;;  %v2224_v48 = vmul.f32 %v3386_v43, %v2222_v52 }
0x16d4   :  { %v2121_v54 = vmul.f32 %v4055_v47, %v2119_v51 }
0x1731   :  { %v2227_v45 = vpop.permute.xlu0 %2226 }
0x1732   :  { %v2229_v9 = vmul.f32 %v3386_v43, %v2227_v45 }
0x1734   :  { %2231 = vrot.lane.b32.xlu0 %v2229_v9, %s3522_s18  ;;  %v2454_v9 = vld [vmem:[%s4216_s14 + $0x20] sm:$0xff] }
0x1737   :  { %v2124_v50 = vpop.permute.xlu1 %2123 }
0x1738   :  { %v2126_v1 = vmul.f32 %v4055_v47, %v2124_v50 }
0x173a   :  { %2128 = vrot.lane.b32.xlu1 %v2126_v1, %s3522_s18  ;;  %v2612_v1 = vld [vmem:[#allocation9] ss:$0 sm:$0xff] }
0x17a6   :  { %v2232_v28 = vpop.permute.xlu0 %2231 }
0x17a7   :  { %v2234_v4 = vadd.f32 %v2232_v28, %v2224_v48 }
0x17a9   :  { %3389 = vtanh.f32 %v2234_v4 }
0x17ac   :  { %v2129_v55 = vpop.permute.xlu1 %2128 }
0x17ad   :  { %v2131_v56 = vadd.f32 %v2129_v55, %v2121_v54  ;;  %v2456_v55 = vld [vmem:[%s4216_s14 + $0x30] sm:$0xff] }
0x17af   :  { %3391 = vtanh.f32 %v2131_v56  ;;  %v2457_v56 = vld [vmem:[%s4216_s14 + $0x38] sm:$0xff] }
0x17b3   :  { %v3390_v57 = vpop.eup %3389 }
0x17b4   :  { %2237 = vrot.lane.b32.xlu0 %v3390_v57, %s3521_s5  ;;  %v3247_v57 = vpack.c.bf16 %v2457_v56, %v2456_v55 }
0x17b8   :  { %917 = vrot.lane.b32.xlu0 %v3861_v34, %s3522_s18  ;;  %v2253_v34 = vld [vmem:[%s4212_s10] sm:$0xff] }
0x17b9   :  { %v3392_v58 = vpop.eup %3391 }
0x17ba   :  { %2134 = vrot.lane.b32.xlu1 %v3392_v58, %s3521_s5  ;;  %v2615_v58 = vld [vmem:[%s4215_s13] ss:$0 sm:$0xff] }
0x17bc   :  { %1362 = vrot.lane.b32.xlu0 %v3938_v63, %s3522_s18  ;;  %v2254_v63 = vld [vmem:[%s4212_s10 + $0x8] sm:$0xff] }
0x17be   :  { %1141 = vrot.lane.b32.xlu1 %v3899_v20, %s3522_s18  ;;  %v3203_v20 = vpack.c.bf16 %v2254_v63, %v2253_v34 }
0x17c0   :  { %923 = vrot.lane.b32.xlu0 %v3858_v31, %s3521_s5  ;;  %3204 = vmatprep.subr.bf16.mxu1 %v3203_v20  ;;  %v2256_v31 = vld [vmem:[%s4212_s10 + $0x18] sm:$0xff] }
0x17c1   :  { %3206 = vmatpush3.bf16.msra.mxu1 %v3203_v20 }
0x17c2   :  { %702 = vrot.lane.b32.xlu1 %v3822_v46, %s3521_s5  ;;  %v2255_v46 = vld [vmem:[%s4212_s10 + $0x10] sm:$0xff] }
0x17c4   :  { %1368 = vrot.lane.b32.xlu0 %v3934_v61, %s3521_s5  ;;  %v2257_v61 = vld [vmem:[%s4212_s10 + $0x20] sm:$0xff] }
0x17c6   :  { %1147 = vrot.lane.b32.xlu1 %v3896_v15, %s3521_s5  ;;  %v3207_v15 = vpack.c.bf16 %v2256_v31, %v2255_v46 }
0x17c8   :  { %1806 = vrot.lane.b32.xlu0 %v4010_v36, %s3521_s5  ;;  %3208 = vmatprep.subr.bf16.mxu1 %v3207_v15 }
0x17c9   :  { %3210 = vmatpush3.bf16.msra.mxu1 %v3207_v15 }
0x17ca   :  { %1587 = vrot.lane.b32.xlu1 %v3972_v44, %s3521_s5  ;;  %v2258_v44 = vld [vmem:[%s4212_s10 + $0x28] sm:$0xff] }
0x17cb   :  { %v3211_v36 = vpack.c.bf16 %v2258_v44, %v2257_v61  ;;  %v2618_v61 = vld [vmem:[%s4217_s15] ss:$0 sm:$0xff] }
0x17cd   :  { %3212 = vmatprep.subr.bf16.mxu1 %v3211_v36 }
0x17ce   :  { %2028 = vrot.lane.b32.xlu1 %v4040_v19, %s3521_s5  ;;  %3214 = vmatpush3.bf16.msra.mxu1 %v3211_v36 }
0x17d2   :  { %1801 = vrot.lane.b32.xlu1 %v4013_v14, %s3522_s18  ;;  %v2259_v14 = vld [vmem:[%s4212_s10 + $0x30] sm:$0xff] }
0x17d3   :  { %v3215_v60 = vpack.c.bf16 %v2260_v59, %v2259_v14 }
0x17d5   :  { %3216 = vmatprep.subr.bf16.mxu1 %v3215_v60 }
0x17d6   :  { %3218 = vmatpush3.bf16.msra.mxu1 %v3215_v60 }
0x17d7   :  { %3236 = vmatprep.subr.bf16.mxu1 %v3235_v18 }
0x1826   :  { %v2238_v62 = vpop.permute.xlu0 %2237 }
0x1827   :  { %v2240_v0 = vmul.f32 %v3386_v43, %v2238_v62  ;;  %v2453_v43 = vld [vmem:[%s4216_s14 + $0x18] sm:$0xff] }
0x1828   :  { %v3239_v45 = vpack.c.bf16 %v2453_v43, %v2452_v42 }
0x1829   :  { %2247 = vrot.lane.b32.xlu0 %v2240_v0, %s3521_s5 }
0x182a   :  { %v918_v2 = vpop.permute.xlu0 %917 }
0x182b   :  { %921 = vst.msk [vmem:[#allocation2] sm:$0xc] %vm920_vm7, %v918_v2 }
0x182c   :  { %v2135_v10 = vpop.permute.xlu1 %2134 }
0x182d   :  { %v2137_v17 = vmul.f32 %v4055_v47, %v2135_v10  ;;  %2023 = vrot.lane.b32.xlu0 %v4043_v23, %s3522_s18  ;;  %v2455_v47 = vld [vmem:[%s4216_s14 + $0x28] sm:$0xff]  ;;  %s3523_s14 = smov [#allocation11]  }
0x182e   :  { %v1363_v19 = vpop.permute.xlu0 %1362  ;;  %v3243_v50 = vpack.c.bf16 %v2455_v47, %v2454_v9  ;;  %s2554_s11 = sshll.u32 %s3523_s14, 4  ;;  %s2555_s11 = int_to_ptr.vmem [resolvable:$true] %s2554_s11 }
0x182f   :  { %1366 = vst.msk [vmem:[#allocation2] sm:$0xc0] %vm1365_vm8, %v1363_v19  ;;  %2242 = vrot.lane.b32.xlu1 %v2137_v17, %s3522_s18  ;;  %s3481_s13 = scalar_lea.vmem %s2555_s11, 256  ;;  %p3486_p5 = scmp.lt.s32.totalorder %s2555_s11, %s2555_s11 }
0x1830   :  { %v1142_v22 = vpop.permute.xlu1 %1141  ;;  %p3482_p4 = scmp.ne.s32.totalorder %s2555_s11, %s3481_s13  ;;  %p3487_p6 = scmp.lt.s32.totalorder %s3481_s13, %s3481_s13 }
0x1831   :  { %1145 = vst.msk [vmem:[#allocation2] sm:$0x30] %vm1144_vm9, %v1142_v22 }
0x1832   :  { %v924_v24 = vpop.permute.xlu0 %923  ;;  %p3488_p7 = por %p3487_p6, %p3486_p5 }
0x1833   :  { %927 = vst.msk [vmem:[#allocation2 + $0x8] sm:$0x30] %vm926_vm10, %v924_v24 }
0x1834   :  { %v703_v23 = vpop.permute.xlu1 %702  ;;  %p3489_p8 = pnand %p3488_p7, %p3482_p4 }
0x1835   :  { %706 = vst.msk [vmem:[#allocation2 + $0x8] sm:$0xc0] %vm705_vm11, %v703_v23 }
0x1836   :  { %v1369_v25 = vpop.permute.xlu0 %1368 }
0x1837   :  { %1372 = vst.msk [vmem:[#allocation2 + $0x8] sm:$0x3] %vm1371_vm12, %v1369_v25 }
0x1838   :  { %1585 = vst.msk [vmem:[#allocation2 + $0x8] sm:$0x3] %vm699_vm6, %v3982_v53  ;;  %v1148_v26 = vpop.permute.xlu1 %1147 }
0x1839   :  { %1151 = vst.msk [vmem:[#allocation2 + $0x8] sm:$0xc] %vm1150_vm13, %v1148_v26 }
0x183a   :  { %v1807_v27 = vpop.permute.xlu0 %1806 }
0x183b   :  { %1809 = vst.msk [vmem:[#allocation2] sm:$0x30] %vm926_vm10, %v1807_v27 }
0x183c   :  { %v1588_v29 = vpop.permute.xlu1 %1587 }
0x183d   :  { %1590 = vst.msk [vmem:[#allocation2] sm:$0xc0] %vm705_vm11, %v1588_v29 }
0x1840   :  { %v2029_v30 = vpop.permute.xlu1 %2028 }
0x1841   :  { %2031 = vst.msk [vmem:[#allocation2] sm:$0xc] %vm1150_vm13, %v2029_v30 }
0x1844   :  { %v1802_v32 = vpop.permute.xlu1 %1801 }
0x1845   :  { %1804 = vst.msk [vmem:[#allocation2 + $0x8] sm:$0xc] %vm920_vm7, %v1802_v32 }
0x189b   :  { %v2248_v33 = vpop.permute.xlu0 %2247 }
0x189c   :  { %2250 = vst.msk [vmem:[#allocation2] sm:$0x3] %vm1371_vm12, %v2248_v33 }
0x189f   :  { %v2024_v35 = vpop.permute.xlu0 %2023 }
0x18a0   :  { %2026 = vst.msk [vmem:[#allocation2 + $0x8] sm:$0x30] %vm1144_vm9, %v2024_v35 }
0x18a1   :  { %v2243_v53 = vpop.permute.xlu1 %2242 }
0x18a2   :  { %2245 = vst.msk [vmem:[#allocation2 + $0x8] sm:$0xc0] %vm1365_vm8, %v2243_v53 }
0x18a3   :  { %v2251_v37 = vld [vmem:[#allocation2] sm:$0xff] }
0x18a4   :  { %3018 = vmatprep.mubr.msk.f32.mxu1 %vm2268_vm14, %v2251_v37 }
0x18a9   :  { %v2252_v38 = vld [vmem:[#allocation2 + $0x8] sm:$0xff] }
0x18aa   :  { %3019 = vmatmul.mubr.msk.f32.vlgmr.msra.gmra.mrb[20].mxu1 %vm2268_vm14, %v2252_v38 }
0x18ab   :  { %3238 = vmatpush3.bf16.msra.mxu1 %v3235_v18 }
0x18ac   :  { %3240 = vmatprep.subr.bf16.mxu1 %v3239_v45 }
0x18af   :  { %3242 = vmatpush3.bf16.msra.mxu1 %v3239_v45 }
0x18b0   :  { %3244 = vmatprep.subr.bf16.mxu1 %v3243_v50 }
0x18b3   :  { %3246 = vmatpush3.bf16.msra.mxu1 %v3243_v50 }
0x18b4   :  { %3248 = vmatprep.subr.bf16.mxu1 %v3247_v57 }
0x18b7   :  { %3250 = vmatpush3.bf16.msra.mxu1 %v3247_v57 }
0x197d   :  { %v3020_v52 = vpop.f32.mrb[20].mxu1 }
0x197e   :  { %v2347_v48 = vadd.f32 %v3020_v52, %v2612_v1  ;;  %v2341_v28 = vpop.f32.mrb[21].mxu1 }
0x197f   :  { %v2342_v4 = vadd.f32 %v2612_v1, %v2341_v28 }
0x1980   :  { %v2351_v54 = vmax.f32 %v2347_v48, 0.0 }
0x1981   :  { %v2350_v51 = vmax.f32 %v2342_v4, 0.0 }
0x1983   :  { %3037 = vmatprep.mubr.msk.f32.mxu0 %vm2268_vm14, %v2350_v51 }
0x1984   :  { %3038 = vmatmul.mubr.msk.f32.vlgmr.msra.gmra.mrb[20].mxu0 %vm2268_vm14, %v2351_v54 }
0x1a57   :  { %v3039_v34 = vpop.f32.mrb[20].mxu0 }
0x1a58   :  { %v2445_v63 = vadd.f32 %v3039_v34, %v2615_v58  ;;  %v2439_v20 = vpop.f32.mrb[21].mxu0 }
0x1a59   :  { %v2440_v46 = vadd.f32 %v2615_v58, %v2439_v20 }
0x1a5a   :  { %v2449_v15 = vmax.f32 %v2445_v63, 0.0 }
0x1a5b   :  { %v2448_v31 = vmax.f32 %v2440_v46, 0.0 }
0x1a5d   :  { %3056 = vmatprep.mubr.msk.f32.mxu1 %vm2268_vm14, %v2448_v31 }
0x1a5e   :  { %3057 = vmatmul.mubr.msk.f32.vlgmr.msra.gmra.mrb[22].mxu1 %vm2268_vm14, %v2449_v15 }
0x1b31   :  { %v3058_v44 = vpop.f32.mrb[22].mxu1 }
0x1b32   :  { %v2543_v36 = vadd.f32 %v3058_v44, %v2618_v61  ;;  %v2537_v14 = vpop.f32.mrb[23].mxu1 }
0x1b33   :  { %v2538_v59 = vadd.f32 %v2618_v61, %v2537_v14 }
0x1b34   :  { %2548 = vst.msk [vmem:[#allocation11 + $0x8] sm:$0xff] %vm2546_vm15, %v2543_v36 }
0x1b35   :  { %2547 = vst.msk [vmem:[#allocation11] sm:$0xff] %vm2546_vm15, %v2538_v59 }
0x1b36   :  { %3492 = shalt.err (!%p3489_p8)
}
0x1b37   :  { %s4224_s15 = sld [smem:[#allocation17_spill]] }
0x1b3d   :  { %s3493_s20 = scalar_lea.hbm %s4224_s15, 256 }
0x1b3e   :  { %p3494_p9 = scmp.ne.s32.totalorder %s4224_s15, %s3493_s20  ;;  %p3497_p10 = scmp.lt.u32.totalorder %s3493_s20, %s4224_s15 }
0x1b40   :  { %p3499_p11 = pnand %p3497_p10, %p3494_p9 }
0x1b42   :  { %3502 = shalt.err (!%p3499_p11)
}
0x1b43   :  { %2560 = dma.vmem_to_hbm [thread:$0]  %s2555_s11, 256, %s4224_s15, [#allocation5], %s3512_s0, %s3512_s0, %s3513_s17  }
0x1b44   :  { %3509 = dma.done.wait [#allocation5], 256  }
0x1b45   :  { %3510 = vsyncadd [#allocation5], 4294967040 }
0x1b46   :  { %2564 = vsyncpa [#allocation4], 1 }
0x1b47   :  { %2565 = vsyncpa [#allocation7], 1 }
0x1b48   :  { %2566 = vsyncpa [#allocation10], 1 }
0x1b49   :  { %2567 = vsyncpa [#allocation5], 1 }

</bundles_post_ra>
